<compile_context>
chip_gen: v7x
topology: tpu7x:2x2x1
jax: 0.10.0
libtpu: 0.0.40
codegen_flags: <defaults>
</compile_context>

<pallas_src>
import functools
import math

import jax
import jax.numpy as jnp
from jax.experimental import pallas as pl
from jax.experimental.pallas import tpu as pltpu

LANES = 128
SUBLANES = 8


def _round_up(x, m):
    return -(-x // m) * m


def _padded_tile_bytes(shape, itemsize):
    """Approximate VMEM footprint of a block (minor dim -> 128, 2nd minor -> 8)."""
    dims = list(shape)
    dims[-1] = _round_up(dims[-1], LANES)
    if len(dims) >= 2:
        dims[-2] = _round_up(dims[-2], SUBLANES)
    n = 1
    for d in dims:
        n *= d
    return n * itemsize


def _choose_stripe_rows(h_out, w_out, wp, cin, cout, kh, kw, itemsize,
                        budget_bytes, max_rows=64):
    """Largest stripe height TH (multiple of 8, dividing Hout, giving >=2 stripes
    when possible) whose per-step VMEM footprint fits the budget."""
    kkc = kh * kw * cin
    cands = [th for th in range(SUBLANES, h_out + 1, SUBLANES)
             if h_out % th == 0 and th <= max_rows]
    if h_out >= 2 * SUBLANES:
        two_plus = [th for th in cands if h_out // th >= 2]
        cands = two_plus or cands
    if not cands:
        return h_out  # tiny images: single stripe per image

    def step_bytes(th):
        thk = th + kh - 1
        b = 2 * _padded_tile_bytes((thk, wp, cin), itemsize)        # in (dbl buf)
        b += 2 * _padded_tile_bytes((th, w_out * cout), itemsize)   # out (dbl buf)
        b += _padded_tile_bytes((th, w_out, kkc), itemsize)         # im2col scratch
        b += 2 * _padded_tile_bytes((kkc, cout), itemsize)          # weights
        return b

    for th in sorted(cands, reverse=True):
        if step_bytes(th) <= budget_bytes:
            return th
    return min(cands)


def _conv_block_kernel(x_ref, w_ref, scale_ref, shift_ref, o_ref, lhs_ref, *,
                       kh, kw, cin, cout, th, w_out, pack_lanes):
    """One (batch, row-stripe) tile per grid step.

    x_ref:     (1, 1, th+kh-1, Wp, cin)  reflect-padded input stripe (with halo)
    w_ref:     (kh*kw*cin, cout)         im2col weights
    scale_ref: (1, cout)  f32            folded BN scale = gamma / sqrt(var+eps)
    shift_ref: (1, cout)  f32            folded shift = beta + (bias - mean)*scale
    o_ref:     (1, th, w_out*cout)  if pack_lanes else (1, th*w_out, cout)
    lhs_ref:   VMEM scratch (th, w_out, kh*kw*cin): the im2col patch matrix
    """
    # --- im2col: one relayout pass of the stripe into the VMEM scratch. ---
    for dh in range(kh):
        for dw in range(kw):
            tap = dh * kw + dw
            lhs_ref[:, :, tap * cin:(tap + 1) * cin] = (
                x_ref[0, 0, dh:dh + th, dw:dw + w_out, :])

    # --- single MXU contraction over K = kh*kw*cin, f32 accumulation. ---
    lhs = lhs_ref[...].reshape(th * w_out, kh * kw * cin)
    acc = jnp.dot(lhs, w_ref[...], preferred_element_type=jnp.float32)

    # --- fused epilogue: conv bias + eval-mode BatchNorm + ReLU, in f32. ---
    y = jnp.maximum(acc * scale_ref[...] + shift_ref[...], 0.0)

    if pack_lanes:
        # Re-pack (th*w_out, cout) -> (th, w_out*cout) so the HBM stores are
        # full-lane (unmasked) and exactly the useful bytes.  Built from a
        # leading-dim split + lane concat (well-supported lowerings).
        y3 = y.reshape(th, w_out, cout)
        y = jnp.concatenate([y3[:, u, :] for u in range(w_out)], axis=-1)
    o_ref[0] = y.astype(o_ref.dtype)


def prepare_conv_block_params(weight, conv_bias, gamma, beta, running_mean,
                              running_var, *, eps=1e-5, compute_dtype=None):
    """Fold conv bias + eval-mode BN and reshape weights for the im2col kernel.
    Call ONCE at parameter-init time (not per forward call)."""
    cout, cin, kh, kw = weight.shape
    # (Cout, Cin, KH, KW) -> (KH*KW*Cin, Cout), K ordered as (dh, dw, ci).
    w_im2col = jnp.transpose(weight, (2, 3, 1, 0)).reshape(kh * kw * cin, cout)
    if compute_dtype is not None:
        w_im2col = w_im2col.astype(compute_dtype)  # e.g. bf16 matmul inputs
    scale = (gamma / jnp.sqrt(running_var + eps)).astype(jnp.float32)
    shift = (beta + (conv_bias - running_mean) * scale).astype(jnp.float32)
    return dict(w_im2col=w_im2col, scale=scale.reshape(1, cout),
                shift=shift.reshape(1, cout), kh=kh, kw=kw, cin=cin, cout=cout)


def conv_block_apply(x, params, *, padding_mode="reflect", stride=1,
                     max_stripe_rows=64, vmem_budget_bytes=40 * 1024 * 1024):
    """x: (N, H, W, Cin) NHWC.  Returns (N, Hout, Wout, Cout)."""
    if stride != 1:
        # TODO(synk): strided convolution (stride > 1) not implemented in-kernel.
        raise NotImplementedError("stride > 1 not supported")
    n, h, w, cin = x.shape
    kh, kw, cout = params["kh"], params["kw"], params["cout"]
    assert params["cin"] == cin
    kkc = kh * kw * cin

    # Matches the module: p = ceil((k-1)/2) applied to both spatial dims
    # (kernel_size is a single int in the module, so KH == KW).
    p = int(math.ceil((kh - 1) / 2.0))
    pad_cfg = ((0, 0), (p, p), (p, p), (0, 0))
    # TODO(synk): build the reflect halo in-kernel (manual DMA of unpadded rows)
    # to remove this extra HBM pass over the input.
    if padding_mode == "reflect":
        xp = jnp.pad(x, pad_cfg, mode="reflect")
    elif padding_mode == "replicate":
        xp = jnp.pad(x, pad_cfg, mode="edge")
    elif padding_mode == "zeros":
        xp = jnp.pad(x, pad_cfg, mode="constant")
    else:
        raise NotImplementedError(f"padding {padding_mode} is not implemented")
    hp, wp = xp.shape[1], xp.shape[2]
    h_out, w_out = hp - kh + 1, wp - kw + 1

    th = _choose_stripe_rows(h_out, w_out, wp, cin, cout, kh, kw,
                             x.dtype.itemsize, vmem_budget_bytes,
                             max_rows=max_stripe_rows)
    s = h_out // th
    thk = th + kh - 1

    # Row stripes with a (kh-1)-row halo: each grid step gets a plain Blocked
    # block, so the BlockSpec pipeline double-buffers DMA/compute/writeback.
    xs = jnp.stack([xp[:, i * th:i * th + thk] for i in range(s)], axis=1)
    # xs: (N, S, TH+KH-1, Wp, Cin)

    w_im2col = params["w_im2col"].astype(x.dtype)
    scale, shift = params["scale"], params["shift"]

    # Lane-dense output packing when the packed row width hits full lanes.
    pack_lanes = (cout % LANES != 0) and ((w_out * cout) % LANES == 0) \
        and w_out <= 256
    if pack_lanes:
        out_shape = jax.ShapeDtypeStruct((n, h_out, w_out * cout), x.dtype)
        out_spec = pl.BlockSpec((1, th, w_out * cout), lambda b, i: (b, i, 0))
    else:
        out_shape = jax.ShapeDtypeStruct((n, h_out * w_out, cout), x.dtype)
        out_spec = pl.BlockSpec((1, th * w_out, cout), lambda b, i: (b, i, 0))

    kernel = functools.partial(_conv_block_kernel, kh=kh, kw=kw, cin=cin,
                               cout=cout, th=th, w_out=w_out,
                               pack_lanes=pack_lanes)

    flops = 2 * n * h_out * w_out * kkc * cout
    bytes_accessed = (xs.size * xs.dtype.itemsize
                      + w_im2col.size * w_im2col.dtype.itemsize
                      + scale.size * 4 + shift.size * 4
                      + n * h_out * w_out * cout * x.dtype.itemsize)

    out = pl.pallas_call(
        kernel,
        out_shape=out_shape,
        grid_spec=pltpu.PrefetchScalarGridSpec(
            num_scalar_prefetch=0,
            grid=(n, s),
            in_specs=[
                pl.BlockSpec((1, 1, thk, wp, cin),
                             lambda b, i: (b, i, 0, 0, 0)),
                # Constant index maps: the pipeline fetches these once and keeps
                # them VMEM-resident across all grid steps.
                pl.BlockSpec((kkc, cout), lambda b, i: (0, 0)),
                pl.BlockSpec((1, cout), lambda b, i: (0, 0)),
                pl.BlockSpec((1, cout), lambda b, i: (0, 0)),
            ],
            out_specs=out_spec,
            scratch_shapes=[pltpu.VMEM((th, w_out, kkc), x.dtype)],
        ),
        compiler_params=pltpu.CompilerParams(
            # Both axes independent -> megacore / 2-TC sharding even at N=1.
            dimension_semantics=("parallel", "parallel"),
            # Explicit scoped-VMEM ceiling; stripe sizing targets ~40 MiB so the
            # kernel also fits v7x's 64 MiB physical VMEM.
            vmem_limit_bytes=64 * 1024 * 1024,
        ),
        cost_estimate=pl.CostEstimate(flops=flops, transcendentals=0,
                                      bytes_accessed=bytes_accessed),
    )(xs, w_im2col, scale, shift)

    return out.reshape(n, h_out, w_out, cout)


def conv_block(x, weight, conv_bias, gamma, beta, running_mean, running_var, *,
               eps=1e-5, **kwargs):
    params = prepare_conv_block_params(weight, conv_bias, gamma, beta,
                                       running_mean, running_var, eps=eps)
    return conv_block_apply(x, params, **kwargs)


if __name__ == "__main__":
    # Small shapes consistent with the module: batch=2, in=4, out=8, 16x16, k=3.
    N, Cin, Cout, H, W, K = 2, 4, 8, 16, 16, 3
    key = jax.random.PRNGKey(0)
    kx, kw_, kb, kg, kbe, km, kv = jax.random.split(key, 7)

    x = jax.random.normal(kx, (N, H, W, Cin), dtype=jnp.float32)
    bound = 1.0 / math.sqrt(Cin * K * K)
    weight = jax.random.uniform(kw_, (Cout, Cin, K, K), minval=-bound,
                                maxval=bound, dtype=jnp.float32)
    conv_bias = jax.random.uniform(kb, (Cout,), minval=-bound, maxval=bound,
                                   dtype=jnp.float32)
    gamma = jax.random.uniform(kg, (Cout,), minval=0.5, maxval=1.5,
                               dtype=jnp.float32)
    beta = 0.1 * jax.random.normal(kbe, (Cout,), dtype=jnp.float32)
    running_mean = 0.1 * jax.random.normal(km, (Cout,), dtype=jnp.float32)
    running_var = jax.random.uniform(kv, (Cout,), minval=0.5, maxval=1.5,
                                     dtype=jnp.float32)

    y = conv_block(x, weight, conv_bias, gamma, beta, running_mean, running_var)
    jax.block_until_ready(y)

    # Plain-JAX reference: reflect pad -> conv -> eval-mode BN -> ReLU.
    xp_ref = jnp.pad(x, ((0, 0), (1, 1), (1, 1), (0, 0)), mode="reflect")
    w_hwio = jnp.transpose(weight, (2, 3, 1, 0))
    y_conv = jax.lax.conv_general_dilated(
        xp_ref, w_hwio, window_strides=(1, 1), padding="VALID",
        dimension_numbers=("NHWC", "HWIO", "NHWC"),
        precision=jax.lax.Precision.HIGHEST) + conv_bias
    scale_ref = gamma / jnp.sqrt(running_var + 1e-5)
    y_ref = jnp.maximum(y_conv * scale_ref + (beta - running_mean * scale_ref),
                        0.0)

    assert y.shape == (N, H, W, Cout), y.shape
    assert jnp.allclose(y, y_ref, atol=1e-4, rtol=1e-4), \
        float(jnp.max(jnp.abs(y - y_ref)))

    print("KERNEL_OK")
</pallas_src>

<mosaic_0001>
module attributes {stable_mosaic.version = 11 : i64} {
  func.func @_conv_block_kernel(%arg0: i32, %arg1: i32, %arg2: memref<1x1x10x18x4xf32, #tpu.memory_space<vmem>>, %arg3: memref<36x8xf32, #tpu.memory_space<vmem>>, %arg4: memref<1x8xf32, #tpu.memory_space<vmem>>, %arg5: memref<1x8xf32, #tpu.memory_space<vmem>>, %arg6: memref<1x8x128xf32, #tpu.memory_space<vmem>>, %arg7: memref<8x16x36xf32, #tpu.memory_space<vmem>>) attributes {dimension_semantics = [#tpu.dimension_semantics<parallel>, #tpu.dimension_semantics<parallel>], iteration_bounds = array<i64: 2, 2>, scalar_prefetch = 0 : i64, scratch_operands = 1 : i64, tpu.core_type = #tpu.core_type<tc>, window_params = [{transform_indices = @transform_0, window_bounds = array<i64: 1, 1, 10, 18, 4>}, {pipeline_mode = #tpu.pipeline_mode<synchronous>, transform_indices = @transform_1, window_bounds = array<i64: 36, 8>}, {pipeline_mode = #tpu.pipeline_mode<synchronous>, transform_indices = @transform_2, window_bounds = array<i64: 1, 8>}, {pipeline_mode = #tpu.pipeline_mode<synchronous>, transform_indices = @transform_3, window_bounds = array<i64: 1, 8>}, {transform_indices = @transform_4, window_bounds = array<i64: 1, 8, 128>}]} {
    %c0 = arith.constant 0 : index
    %c0_0 = arith.constant 0 : index
    %c0_1 = arith.constant 0 : index
    %c0_2 = arith.constant 0 : index
    %c0_3 = arith.constant 0 : index
    %0 = vector.load %arg2[%c0, %c0_0, %c0_1, %c0_2, %c0_3] : memref<1x1x10x18x4xf32, #tpu.memory_space<vmem>>, vector<1x1x8x16x4xf32>
    %1 = vector.shape_cast %0 : vector<1x1x8x16x4xf32> to vector<8x16x4xf32>
    %c0_4 = arith.constant 0 : index
    %c0_5 = arith.constant 0 : index
    %c0_6 = arith.constant 0 : index
    %2 = vector.load %arg7[%c0_4, %c0_5, %c0_6] : memref<8x16x36xf32, #tpu.memory_space<vmem>>, vector<8x16x4xf32>
    tpu.vector_store %arg7[%c0_4, %c0_5, %c0_6], %1 {strides = array<i32>} : memref<8x16x36xf32, #tpu.memory_space<vmem>>, vector<8x16x4xf32>,
    %c0_7 = arith.constant 0 : index
    %c0_8 = arith.constant 0 : index
    %c0_9 = arith.constant 0 : index
    %c1 = arith.constant 1 : index
    %c0_10 = arith.constant 0 : index
    %3 = vector.load %arg2[%c0_7, %c0_8, %c0_9, %c1, %c0_10] : memref<1x1x10x18x4xf32, #tpu.memory_space<vmem>>, vector<1x1x8x16x4xf32>
    %4 = vector.shape_cast %3 : vector<1x1x8x16x4xf32> to vector<8x16x4xf32>
    %c0_11 = arith.constant 0 : index
    %c0_12 = arith.constant 0 : index
    %c4 = arith.constant 4 : index
    %5 = vector.load %arg7[%c0_11, %c0_12, %c4] : memref<8x16x36xf32, #tpu.memory_space<vmem>>, vector<8x16x4xf32>
    tpu.vector_store %arg7[%c0_11, %c0_12, %c4], %4 {strides = array<i32>} : memref<8x16x36xf32, #tpu.memory_space<vmem>>, vector<8x16x4xf32>,
    %c0_13 = arith.constant 0 : index
    %c0_14 = arith.constant 0 : index
    %c0_15 = arith.constant 0 : index
    %c2 = arith.constant 2 : index
    %c0_16 = arith.constant 0 : index
    %6 = vector.load %arg2[%c0_13, %c0_14, %c0_15, %c2, %c0_16] : memref<1x1x10x18x4xf32, #tpu.memory_space<vmem>>, vector<1x1x8x16x4xf32>
    %7 = vector.shape_cast %6 : vector<1x1x8x16x4xf32> to vector<8x16x4xf32>
    %c0_17 = arith.constant 0 : index
    %c0_18 = arith.constant 0 : index
    %c8 = arith.constant 8 : index
    %8 = vector.load %arg7[%c0_17, %c0_18, %c8] : memref<8x16x36xf32, #tpu.memory_space<vmem>>, vector<8x16x4xf32>
    tpu.vector_store %arg7[%c0_17, %c0_18, %c8], %7 {strides = array<i32>} : memref<8x16x36xf32, #tpu.memory_space<vmem>>, vector<8x16x4xf32>,
    %c0_19 = arith.constant 0 : index
    %c0_20 = arith.constant 0 : index
    %c1_21 = arith.constant 1 : index
    %c0_22 = arith.constant 0 : index
    %c0_23 = arith.constant 0 : index
    %9 = vector.load %arg2[%c0_19, %c0_20, %c1_21, %c0_22, %c0_23] : memref<1x1x10x18x4xf32, #tpu.memory_space<vmem>>, vector<1x1x8x16x4xf32>
    %10 = vector.shape_cast %9 : vector<1x1x8x16x4xf32> to vector<8x16x4xf32>
    %c0_24 = arith.constant 0 : index
    %c0_25 = arith.constant 0 : index
    %c12 = arith.constant 12 : index
    %11 = vector.load %arg7[%c0_24, %c0_25, %c12] : memref<8x16x36xf32, #tpu.memory_space<vmem>>, vector<8x16x4xf32>
    tpu.vector_store %arg7[%c0_24, %c0_25, %c12], %10 {strides = array<i32>} : memref<8x16x36xf32, #tpu.memory_space<vmem>>, vector<8x16x4xf32>,
    %c0_26 = arith.constant 0 : index
    %c0_27 = arith.constant 0 : index
    %c1_28 = arith.constant 1 : index
    %c1_29 = arith.constant 1 : index
    %c0_30 = arith.constant 0 : index
    %12 = vector.load %arg2[%c0_26, %c0_27, %c1_28, %c1_29, %c0_30] : memref<1x1x10x18x4xf32, #tpu.memory_space<vmem>>, vector<1x1x8x16x4xf32>
    %13 = vector.shape_cast %12 : vector<1x1x8x16x4xf32> to vector<8x16x4xf32>
    %c0_31 = arith.constant 0 : index
    %c0_32 = arith.constant 0 : index
    %c16 = arith.constant 16 : index
    %14 = vector.load %arg7[%c0_31, %c0_32, %c16] : memref<8x16x36xf32, #tpu.memory_space<vmem>>, vector<8x16x4xf32>
    tpu.vector_store %arg7[%c0_31, %c0_32, %c16], %13 {strides = array<i32>} : memref<8x16x36xf32, #tpu.memory_space<vmem>>, vector<8x16x4xf32>,
    %c0_33 = arith.constant 0 : index
    %c0_34 = arith.constant 0 : index
    %c1_35 = arith.constant 1 : index
    %c2_36 = arith.constant 2 : index
    %c0_37 = arith.constant 0 : index
    %15 = vector.load %arg2[%c0_33, %c0_34, %c1_35, %c2_36, %c0_37] : memref<1x1x10x18x4xf32, #tpu.memory_space<vmem>>, vector<1x1x8x16x4xf32>
    %16 = vector.shape_cast %15 : vector<1x1x8x16x4xf32> to vector<8x16x4xf32>
    %c0_38 = arith.constant 0 : index
    %c0_39 = arith.constant 0 : index
    %c20 = arith.constant 20 : index
    %17 = vector.load %arg7[%c0_38, %c0_39, %c20] : memref<8x16x36xf32, #tpu.memory_space<vmem>>, vector<8x16x4xf32>
    tpu.vector_store %arg7[%c0_38, %c0_39, %c20], %16 {strides = array<i32>} : memref<8x16x36xf32, #tpu.memory_space<vmem>>, vector<8x16x4xf32>,
    %c0_40 = arith.constant 0 : index
    %c0_41 = arith.constant 0 : index
    %c2_42 = arith.constant 2 : index
    %c0_43 = arith.constant 0 : index
    %c0_44 = arith.constant 0 : index
    %18 = vector.load %arg2[%c0_40, %c0_41, %c2_42, %c0_43, %c0_44] : memref<1x1x10x18x4xf32, #tpu.memory_space<vmem>>, vector<1x1x8x16x4xf32>
    %19 = vector.shape_cast %18 : vector<1x1x8x16x4xf32> to vector<8x16x4xf32>
    %c0_45 = arith.constant 0 : index
    %c0_46 = arith.constant 0 : index
    %c24 = arith.constant 24 : index
    %20 = vector.load %arg7[%c0_45, %c0_46, %c24] : memref<8x16x36xf32, #tpu.memory_space<vmem>>, vector<8x16x4xf32>
    tpu.vector_store %arg7[%c0_45, %c0_46, %c24], %19 {strides = array<i32>} : memref<8x16x36xf32, #tpu.memory_space<vmem>>, vector<8x16x4xf32>,
    %c0_47 = arith.constant 0 : index
    %c0_48 = arith.constant 0 : index
    %c2_49 = arith.constant 2 : index
    %c1_50 = arith.constant 1 : index
    %c0_51 = arith.constant 0 : index
    %21 = vector.load %arg2[%c0_47, %c0_48, %c2_49, %c1_50, %c0_51] : memref<1x1x10x18x4xf32, #tpu.memory_space<vmem>>, vector<1x1x8x16x4xf32>
    %22 = vector.shape_cast %21 : vector<1x1x8x16x4xf32> to vector<8x16x4xf32>
    %c0_52 = arith.constant 0 : index
    %c0_53 = arith.constant 0 : index
    %c28 = arith.constant 28 : index
    %23 = vector.load %arg7[%c0_52, %c0_53, %c28] : memref<8x16x36xf32, #tpu.memory_space<vmem>>, vector<8x16x4xf32>
    tpu.vector_store %arg7[%c0_52, %c0_53, %c28], %22 {strides = array<i32>} : memref<8x16x36xf32, #tpu.memory_space<vmem>>, vector<8x16x4xf32>,
    %c0_54 = arith.constant 0 : index
    %c0_55 = arith.constant 0 : index
    %c2_56 = arith.constant 2 : index
    %c2_57 = arith.constant 2 : index
    %c0_58 = arith.constant 0 : index
    %24 = vector.load %arg2[%c0_54, %c0_55, %c2_56, %c2_57, %c0_58] : memref<1x1x10x18x4xf32, #tpu.memory_space<vmem>>, vector<1x1x8x16x4xf32>
    %25 = vector.shape_cast %24 : vector<1x1x8x16x4xf32> to vector<8x16x4xf32>
    %c0_59 = arith.constant 0 : index
    %c0_60 = arith.constant 0 : index
    %c32 = arith.constant 32 : index
    %26 = vector.load %arg7[%c0_59, %c0_60, %c32] : memref<8x16x36xf32, #tpu.memory_space<vmem>>, vector<8x16x4xf32>
    tpu.vector_store %arg7[%c0_59, %c0_60, %c32], %25 {strides = array<i32>} : memref<8x16x36xf32, #tpu.memory_space<vmem>>, vector<8x16x4xf32>,
    %c0_61 = arith.constant 0 : index
    %c0_62 = arith.constant 0 : index
    %c0_63 = arith.constant 0 : index
    %27 = vector.load %arg7[%c0_61, %c0_62, %c0_63] : memref<8x16x36xf32, #tpu.memory_space<vmem>>, vector<8x16x36xf32>
    %28 = vector.shape_cast %27 : vector<8x16x36xf32> to vector<128x36xf32>
    %c0_64 = arith.constant 0 : index
    %c0_65 = arith.constant 0 : index
    %29 = vector.load %arg3[%c0_64, %c0_65] : memref<36x8xf32, #tpu.memory_space<vmem>>, vector<36x8xf32>
    %cst = arith.constant dense<0.000000e+00> : vector<128x8xf32>
    %30 = tpu.matmul %28, %29, %cst {dimension_numbers = #tpu.dot_dimension_numbers<[1], [0], [0], [1], [0, 0, 1, 1], [], []>} : vector<128x36xf32>, vector<36x8xf32>, vector<128x8xf32> -> vector<128x8xf32>
    %c0_66 = arith.constant 0 : index
    %c0_67 = arith.constant 0 : index
    %31 = vector.load %arg4[%c0_66, %c0_67] : memref<1x8xf32, #tpu.memory_space<vmem>>, vector<1x8xf32>
    %32 = vector.broadcast %31 : vector<1x8xf32> to vector<128x8xf32>
    %33 = arith.mulf %30, %32 : vector<128x8xf32>
    %c0_68 = arith.constant 0 : index
    %c0_69 = arith.constant 0 : index
    %34 = vector.load %arg5[%c0_68, %c0_69] : memref<1x8xf32, #tpu.memory_space<vmem>>, vector<1x8xf32>
    %35 = vector.broadcast %34 : vector<1x8xf32> to vector<128x8xf32>
    %36 = arith.addf %33, %35 : vector<128x8xf32>
    %cst_70 = arith.constant 0.000000e+00 : f32
    %37 = vector.broadcast %cst_70 : f32 to vector<128x8xf32>
    %38 = arith.maximumf %36, %37 : vector<128x8xf32>
    %39 = vector.shape_cast %38 : vector<128x8xf32> to vector<8x16x8xf32>
    %40 = vector.extract_strided_slice %39 {offsets = [0, 0, 0], sizes = [8, 1, 8], strides = [1, 1, 1]} : vector<8x16x8xf32> to vector<8x1x8xf32>
    %41 = vector.shape_cast %40 : vector<8x1x8xf32> to vector<8x8xf32>
    %42 = vector.extract_strided_slice %39 {offsets = [0, 1, 0], sizes = [8, 1, 8], strides = [1, 1, 1]} : vector<8x16x8xf32> to vector<8x1x8xf32>
    %43 = vector.shape_cast %42 : vector<8x1x8xf32> to vector<8x8xf32>
    %44 = vector.extract_strided_slice %39 {offsets = [0, 2, 0], sizes = [8, 1, 8], strides = [1, 1, 1]} : vector<8x16x8xf32> to vector<8x1x8xf32>
    %45 = vector.shape_cast %44 : vector<8x1x8xf32> to vector<8x8xf32>
    %46 = vector.extract_strided_slice %39 {offsets = [0, 3, 0], sizes = [8, 1, 8], strides = [1, 1, 1]} : vector<8x16x8xf32> to vector<8x1x8xf32>
    %47 = vector.shape_cast %46 : vector<8x1x8xf32> to vector<8x8xf32>
    %48 = vector.extract_strided_slice %39 {offsets = [0, 4, 0], sizes = [8, 1, 8], strides = [1, 1, 1]} : vector<8x16x8xf32> to vector<8x1x8xf32>
    %49 = vector.shape_cast %48 : vector<8x1x8xf32> to vector<8x8xf32>
    %50 = vector.extract_strided_slice %39 {offsets = [0, 5, 0], sizes = [8, 1, 8], strides = [1, 1, 1]} : vector<8x16x8xf32> to vector<8x1x8xf32>
    %51 = vector.shape_cast %50 : vector<8x1x8xf32> to vector<8x8xf32>
    %52 = vector.extract_strided_slice %39 {offsets = [0, 6, 0], sizes = [8, 1, 8], strides = [1, 1, 1]} : vector<8x16x8xf32> to vector<8x1x8xf32>
    %53 = vector.shape_cast %52 : vector<8x1x8xf32> to vector<8x8xf32>
    %54 = vector.extract_strided_slice %39 {offsets = [0, 7, 0], sizes = [8, 1, 8], strides = [1, 1, 1]} : vector<8x16x8xf32> to vector<8x1x8xf32>
    %55 = vector.shape_cast %54 : vector<8x1x8xf32> to vector<8x8xf32>
    %56 = vector.extract_strided_slice %39 {offsets = [0, 8, 0], sizes = [8, 1, 8], strides = [1, 1, 1]} : vector<8x16x8xf32> to vector<8x1x8xf32>
    %57 = vector.shape_cast %56 : vector<8x1x8xf32> to vector<8x8xf32>
    %58 = vector.extract_strided_slice %39 {offsets = [0, 9, 0], sizes = [8, 1, 8], strides = [1, 1, 1]} : vector<8x16x8xf32> to vector<8x1x8xf32>
    %59 = vector.shape_cast %58 : vector<8x1x8xf32> to vector<8x8xf32>
    %60 = vector.extract_strided_slice %39 {offsets = [0, 10, 0], sizes = [8, 1, 8], strides = [1, 1, 1]} : vector<8x16x8xf32> to vector<8x1x8xf32>
    %61 = vector.shape_cast %60 : vector<8x1x8xf32> to vector<8x8xf32>
    %62 = vector.extract_strided_slice %39 {offsets = [0, 11, 0], sizes = [8, 1, 8], strides = [1, 1, 1]} : vector<8x16x8xf32> to vector<8x1x8xf32>
    %63 = vector.shape_cast %62 : vector<8x1x8xf32> to vector<8x8xf32>
    %64 = vector.extract_strided_slice %39 {offsets = [0, 12, 0], sizes = [8, 1, 8], strides = [1, 1, 1]} : vector<8x16x8xf32> to vector<8x1x8xf32>
    %65 = vector.shape_cast %64 : vector<8x1x8xf32> to vector<8x8xf32>
    %66 = vector.extract_strided_slice %39 {offsets = [0, 13, 0], sizes = [8, 1, 8], strides = [1, 1, 1]} : vector<8x16x8xf32> to vector<8x1x8xf32>
    %67 = vector.shape_cast %66 : vector<8x1x8xf32> to vector<8x8xf32>
    %68 = vector.extract_strided_slice %39 {offsets = [0, 14, 0], sizes = [8, 1, 8], strides = [1, 1, 1]} : vector<8x16x8xf32> to vector<8x1x8xf32>
    %69 = vector.shape_cast %68 : vector<8x1x8xf32> to vector<8x8xf32>
    %70 = vector.extract_strided_slice %39 {offsets = [0, 15, 0], sizes = [8, 1, 8], strides = [1, 1, 1]} : vector<8x16x8xf32> to vector<8x1x8xf32>
    %71 = vector.shape_cast %70 : vector<8x1x8xf32> to vector<8x8xf32>
    %72 = tpu.concatenate %41, %43, %45, %47, %49, %51, %53, %55, %57, %59, %61, %63, %65, %67, %69, %71 in 1 : vector<8x8xf32>, vector<8x8xf32>, vector<8x8xf32>, vector<8x8xf32>, vector<8x8xf32>, vector<8x8xf32>, vector<8x8xf32>, vector<8x8xf32>, vector<8x8xf32>, vector<8x8xf32>, vector<8x8xf32>, vector<8x8xf32>, vector<8x8xf32>, vector<8x8xf32>, vector<8x8xf32>, vector<8x8xf32> -> vector<8x128xf32>
    %c0_71 = arith.constant 0 : index
    %c0_72 = arith.constant 0 : index
    %c0_73 = arith.constant 0 : index
    %73 = vector.load %arg6[%c0_71, %c0_72, %c0_73] : memref<1x8x128xf32, #tpu.memory_space<vmem>>, vector<1x8x128xf32>
    %74 = vector.shape_cast %73 : vector<1x8x128xf32> to vector<8x128xf32>
    %75 = vector.shape_cast %72 : vector<8x128xf32> to vector<1x8x128xf32>
    tpu.vector_store %arg6[%c0_71, %c0_72, %c0_73], %75 {strides = array<i32>} : memref<1x8x128xf32, #tpu.memory_space<vmem>>, vector<1x8x128xf32>,
    return
  }
  func.func @transform_0(%arg0: i32, %arg1: i32) -> (i32, i32, i32, i32, i32) {
    %c0_i32 = arith.constant 0 : i32
    %c0_i32_0 = arith.constant 0 : i32
    %c0_i32_1 = arith.constant 0 : i32
    %c0_i32_2 = arith.constant 0 : i32
    return %arg0, %arg1, %c0_i32, %c0_i32_0, %c0_i32_1 : i32, i32, i32, i32, i32
  }
  func.func @transform_1(%arg0: i32, %arg1: i32) -> (i32, i32) {
    %c0_i32 = arith.constant 0 : i32
    %c0_i32_0 = arith.constant 0 : i32
    %c0_i32_1 = arith.constant 0 : i32
    return %c0_i32, %c0_i32_0 : i32, i32
  }
  func.func @transform_2(%arg0: i32, %arg1: i32) -> (i32, i32) {
    %c0_i32 = arith.constant 0 : i32
    %c0_i32_0 = arith.constant 0 : i32
    %c0_i32_1 = arith.constant 0 : i32
    return %c0_i32, %c0_i32_0 : i32, i32
  }
  func.func @transform_3(%arg0: i32, %arg1: i32) -> (i32, i32) {
    %c0_i32 = arith.constant 0 : i32
    %c0_i32_0 = arith.constant 0 : i32
    %c0_i32_1 = arith.constant 0 : i32
    return %c0_i32, %c0_i32_0 : i32, i32
  }
  func.func @transform_4(%arg0: i32, %arg1: i32) -> (i32, i32, i32) {
    %c0_i32 = arith.constant 0 : i32
    %c0_i32_0 = arith.constant 0 : i32
    return %arg0, %arg1, %c0_i32 : i32, i32, i32
  }
}

</mosaic_0001>

<bundles_post_ra>
// kernel: tpu_custom_call.1
= control target key start
LH: loop header
LB: loop body
LE: loop exit
PB: predicated region body
PF: predicated region fallthrough
CT: control target
= control target key end

     0   :  { %s3526_s0 = inlined_call_operand.hbm [shape: f32[2,2,10,18,4], index: 0, kind: input, shape index: {}]   ;;  %s3527_s1 = inlined_call_operand.hbm [shape: f32[36,8], index: 1, kind: input, shape index: {}]   ;;  %s3528_s2 = inlined_call_operand.hbm [shape: f32[1,8], index: 2, kind: input, shape index: {}]   ;;  %s3529_s3 = inlined_call_operand.hbm [shape: f32[1,8], index: 3, kind: input, shape index: {}]   ;;  %s3530_s4 = inlined_call_operand.hbm [shape: f32[2,16,128], index: 4, kind: output, shape index: {}]  }
   0x1   :  { %3540 = sst [smem:[#allocation18_spill]] %s3527_s1 }
   0x2   :  { %3541 = sst [smem:[#allocation19_spill]] %s3528_s2 }
   0x3   :  { %3542 = sst [smem:[#allocation20_spill]] %s3530_s4 }
   0x4   :  { %9 = vsyncpa [#allocation4], 0 }
   0x5   :  { %11 = vsyncpa [#allocation4 + $0x1], 0 }
   0x6   :  { %12 = vsyncpa [#allocation7], 0 }
   0x7   :  { %13 = vsyncpa [#allocation10], 0 }
   0x8   :  { %14 = vsyncpa [#allocation5], 0 }
   0x9   :  { %16 = vsyncpa [#allocation5 + $0x1], 0  ;;  %s2430_s15 = smov 0   ;;  %s2432_s16 = smov 0  }
   0xa   :  { %s2434_s17 = smov 0   ;;  %s2436_s18 = smov 0  }
   0xb   :  { %s2438_s19 = smov 0   ;;  %s2440_s20 = smov 0  }
   0xc   :  { %s2442_s21 = smov 0   ;;  %s2444_s22 = smov 0  }
   0xd LB: > { %3543 = sst [smem:[#allocation16_spill]] %s2349_s15  ;;  %s1821_s23 = sadd.s32 4294967295, %s2377_s22   ;;  %s2377_s22 = sphi %s2444_s22, %s22_s22   ;;  %s2373_s21 = sphi %s2442_s21, %s3572_s21   ;;  %s2369_s20 = sphi %s2440_s20, %s3571_s20   ;;  %s2365_s19 = sphi %s2438_s19, %s3570_s19   ;;  %s2361_s18 = sphi %s2436_s18, %s3569_s18   ;;  %s2357_s17 = sphi %s2434_s17, %s3568_s17   ;;  %s2353_s16 = sphi %s2432_s16, %s3567_s16   ;;  %s2349_s15 = sphi %s2430_s15, %s3566_s15  }
   0xe   : > { %s1822_s24 = sadd.s32 4294967294, %s2377_s22   ;;  %p56_p0 = scmp.ne.s32.totalorder %s2353_s16, %s2349_s15 }
   0xf   : > { %p2474_p1 = scmp.eq.s32.totalorder %s1821_s23, 0  ;;  %p2478_p2 = scmp.eq.s32.totalorder %s1821_s23, 3 }
  0x10   : > { %p151_p3 = scmp.eq.s32.totalorder %s1822_s24, 3  ;;  %p1823_p5 = scmp.ge.s32.totalorder %s2377_s22, 1 }
  0x11   : > { %s3544_s25 = scalar_select %p2474_p1, 1, 0 }
  0x12   : > { %s3545_s26 = scalar_select %p2478_p2, 1, 0 }
  0x13   : > { %p2484_p4 = por %p2474_p1, %p56_p0  ;;  %p2489_p6 = por %p151_p3, %p56_p0 }
  0x14   : > { %p158_p7 = scmp.lt.s32.totalorder %s2377_s22, 5  ;;  %s2379_s30 = smov [#allocation6]  }
  0x15   : > { %s3546_s27 = scalar_select %p2484_p4, 1, 0 }
  0x16   : > { %s3547_s28 = scalar_select %p2489_p6, 1, 0 }
  0x17   : > { %p2494_p8 = pnand %p1823_p5, %p158_p7  ;;  %s170_s5 = sshll.u32 %s2379_s30, 4  ;;  %s2498_s5 = int_to_ptr.vmem [resolvable:$true] %s170_s5 }
  0x18   : > { %3548 = sst [smem:[#allocation17_spill]] %s3547_s28  ;;  %s2380_s7 = smov [#allocation8]  }
  0x19   : > { %s3549_s29 = scalar_select %p2494_p8, 1, 0 }
  0x1a   : > { %p2043_p9 = pneg %p2494_p8  ;;  %s184_s8 = sshll.u32 %s2380_s7, 4  ;;  %s2508_s8 = int_to_ptr.vmem [resolvable:$true] %s184_s8 }
  0x1b   : > { %s2381_s9 = smov [#allocation9]   ;;  %s3551_s1 = sld [smem:[#allocation18_spill]] }
  0x1c   : > { %p2504_p10 = pnand %p2043_p9, %p2474_p1  ;;  %s2510_s10 = sshll.u32 %s2381_s9, 4  ;;  %s196_s10 = int_to_ptr.vmem [resolvable:$true] %s2510_s10 }
  0x1e   : > { %p2520_p12 = pneg %p2504_p10 }
  0x21   : > { %s2157_s13 = scalar_lea.hbm %s3551_s1, 640 }
  0x22   : > { %p2158_p11 = scmp.ne.s32.totalorder %s3551_s1, %s2157_s13  ;;  %p2164_p3 = scmp.lt.u32.totalorder %s2157_s13, %s3551_s1 }
  0x24   : > { %p2160_p13 = pnand %p2520_p12, %p2158_p11 }
  0x26   : > { %p2161_p0 = pneg %p2160_p13 }
  0x28   : > { %p2166_p5 = pnand %p2164_p3, %p2161_p0 }
  0x2a   : > { %2169 = shalt.err (!%p2166_p5)
}
  0x2b   : > { %s2170_s9 = scalar_lea.vmem %s2498_s5, 640  ;;  %p2178_p1 = scmp.lt.s32.totalorder %s2498_s5, %s2498_s5 }
  0x2c   : > { %p2171_p7 = scmp.ne.s32.totalorder %s2498_s5, %s2170_s9  ;;  %p2179_p4 = scmp.lt.s32.totalorder %s2170_s9, %s2170_s9 }
  0x2e   : > { %p2173_p9 = pnand %p2171_p7, %p2520_p12  ;;  %p2180_p11 = por %p2179_p4, %p2178_p1 }
  0x30   : > { %p2174_p6 = pneg %p2173_p9 }
  0x32   : > { %p2181_p13 = pnand %p2180_p11, %p2174_p6 }
  0x34   : > { %2184 = shalt.err (!%p2181_p13)
}
  0x35   : > { %s3538_s11 = smov 128   ;;  %s3539_s12 = smov 8  }
  0x36   : > { %2046 = dma.hbm_to_vmem [thread:$0]  (!%p2504_p10), %s3551_s1, 640, %s2498_s5, [#allocation7], %s3538_s11, %s3538_s11, %s3539_s12  }
  0x37   : > { %s3553_s2 = sld [smem:[#allocation19_spill]] }
  0x3d   : > { %s2185_s7 = scalar_lea.hbm %s3553_s2, 16 }
  0x3e   : > { %p2186_p1 = scmp.ne.s32.totalorder %s3553_s2, %s2185_s7  ;;  %p2192_p0 = scmp.lt.u32.totalorder %s2185_s7, %s3553_s2 }
  0x40   : > { %p2188_p4 = pnand %p2186_p1, %p2520_p12 }
  0x42   : > { %p2189_p6 = pneg %p2188_p4 }
  0x44   : > { %p2194_p3 = pnand %p2192_p0, %p2189_p6 }
  0x46   : > { %2197 = shalt.err (!%p2194_p3)
}
  0x47   : > { %s2198_s5 = scalar_lea.vmem %s2508_s8, 16  ;;  %s2205_s28 = scalar_lea.vmem %s2508_s8, 32 }
  0x48   : > { %p2199_p5 = scmp.ne.s32.totalorder %s2508_s8, %s2198_s5  ;;  %p2206_p11 = scmp.lt.s32.totalorder %s2508_s8, %s2508_s8 }
  0x49   : > { %p2207_p13 = scmp.lt.s32.totalorder %s2205_s28, %s2198_s5 }
  0x4a   : > { %p2201_p7 = pnand %p2199_p5, %p2520_p12 }
  0x4b   : > { %p2208_p1 = por %p2207_p13, %p2206_p11 }
  0x4c   : > { %p2202_p9 = pneg %p2201_p7 }
  0x4e   : > { %p2209_p4 = pnand %p2208_p1, %p2202_p9 }
  0x50   : > { %2212 = shalt.err (!%p2209_p4)
}
  0x51   : > { %2049 = dma.hbm_to_vmem [thread:$0]  (!%p2504_p10), %s3553_s2, 16, %s2508_s8, [#allocation7]  }
  0x52   : > { %s2213_s23 = scalar_lea.hbm %s3529_s3, 16 }
  0x53   : > { %p2214_p6 = scmp.ne.s32.totalorder %s3529_s3, %s2213_s23  ;;  %p2220_p5 = scmp.lt.u32.totalorder %s2213_s23, %s3529_s3 }
  0x55   : > { %p2216_p0 = pnand %p2214_p6, %p2520_p12 }
  0x57   : > { %p2217_p3 = pneg %p2216_p0 }
  0x59   : > { %p2222_p7 = pnand %p2220_p5, %p2217_p3 }
  0x5b   : > { %2225 = shalt.err (!%p2222_p7)
}
  0x5c   : > { %s2226_s28 = scalar_lea.vmem %s196_s10, 16  ;;  %s2233_s8 = scalar_lea.vmem %s196_s10, 32 }
  0x5d   : > { %p2227_p9 = scmp.ne.s32.totalorder %s196_s10, %s2226_s28  ;;  %p2234_p1 = scmp.lt.s32.totalorder %s196_s10, %s196_s10 }
  0x5e   : > { %p2235_p4 = scmp.lt.s32.totalorder %s2233_s8, %s2226_s28 }
  0x5f   : > { %p2229_p11 = pnand %p2227_p9, %p2520_p12 }
  0x60   : > { %p2236_p8 = por %p2235_p4, %p2234_p1 }
  0x61   : > { %p2230_p13 = pneg %p2229_p11 }
  0x63   : > { %p2237_p2 = pnand %p2236_p8, %p2230_p13 }
  0x65   : > { %2240 = shalt.err (!%p2237_p2)
}
  0x66   : > { %2052 = dma.hbm_to_vmem [thread:$0]  (!%p2504_p10), %s3529_s3, 16, %s196_s10, [#allocation10]  }
  0x67   : > { %s31_s24 = sadd.s32 1, %s2369_s20  ;;  %s34_s6 = sadd.s32 1, %s2373_s21 }
  0x68   : > { %p32_p2 = scmp.ge.s32.totalorder %s31_s24, 2  ;;  %s43_s13 = sadd.s32 1, %s2357_s17 }
  0x69   : > { %p50_p8 = scmp.ne.s32.totalorder %s2357_s17, %s2353_s16  ;;  %p51_p12 = scmp.eq.s32.totalorder %s2377_s22, 0 }
  0x6a   : > { %s3574_s24 = smov (%p32_p2, %s31_s24), 0  ;;  %s3576_s6 = smov (!%p32_p2, %s34_s6), %s2373_s21 }
  0x6b   : > { %s39_s14 = ssub.s32 %s2369_s20, %s3574_s24  ;;  %p36_p6 = scmp.ge.s32.totalorder %s3576_s6, 2 }
  0x6c   : > { %p3554_p0 = scmp.ne.s32.totalorder %s3545_s26, 0  ;;  %p52_p10 = por %p51_p12, %p50_p8 }
  0x6d   : > { %p2064_p5 = scmp.lt.s32.totalorder %s2377_s22, 4  ;;  %s3578_s6 = smov (%p36_p6, %s3576_s6), 0 }
  0x6e   : > { %p2600_p3 = por %p3554_p0, %p50_p8  ;;  %s206_s10 = sand.u32 1, %s2357_s17  }
  0x6f   : > { %s2024_s30 = smul.u32 30, %s2369_s20  ;;  %s38_s7 = ssub.s32 %s2373_s21, %s3578_s6 }
  0x70   : > { %s40_s9 = sor.u32 %s39_s14, %s38_s7  ;;  %s2023_s5 = smul.u32 240, %s206_s10 }
  0x71   : > { %p41_p7 = scmp.eq.s32.totalorder %s40_s9, 0  ;;  %s2025_s28 = smul.u32 60, %s2373_s21 }
  0x72   : > { %p2612_p9 = pnand %p2064_p5, %p52_p10  ;;  %s210_s15 = scalar_lea.vmem [#allocation3], %s2023_s5 }
  0x73   : > { %s2617_s26 = scalar_select %p41_p7, %s2357_s17, %s43_s13  }
  0x74   : > { %s216_s4 = sadd.s32 %s2025_s28, %s2024_s30  ;;  %s219_s11 = sshll.u32 %s210_s15, 4  ;;  %s2619_s11 = int_to_ptr.vmem [resolvable:$true] %s219_s11 }
  0x75   : > { %s1828_s12 = sshll.u32 %s216_s4, 7  ;;  %s2626_s7 = scalar_lea.sflag [#allocation4], %s206_s10 }
  0x76   : > { %s2624_s14 = scalar_lea.hbm %s3526_s0, %s1828_s12  ;;  %p2243_p13 = pneg %p2612_p9 }
  0x77   : > { %s2241_s9 = scalar_lea.hbm %s2624_s14, 3840  ;;  %s2246_s1 = scalar_lea.hbm %s3526_s0, 15360 }
  0x78   : > { %p2242_p11 = scmp.ne.s32.totalorder %s2624_s14, %s2241_s9  ;;  %p2247_p2 = scmp.lt.u32.totalorder %s2624_s14, %s3526_s0 }
  0x79   : > { %p2248_p8 = scmp.lt.u32.totalorder %s2246_s1, %s2241_s9  ;;  %p2250_p6 = scmp.lt.u32.totalorder %s2241_s9, %s2624_s14 }
  0x7a   : > { %p2244_p1 = pnand %p2243_p13, %p2242_p11 }
  0x7b   : > { %p2249_p12 = por %p2248_p8, %p2247_p2 }
  0x7c   : > { %p2245_p4 = pneg %p2244_p1 }
  0x7d   : > { %p2251_p0 = por %p2250_p6, %p2249_p12 }
  0x7f   : > { %p2252_p10 = pnand %p2251_p0, %p2245_p4 }
  0x81   : > { %2255 = shalt.err (!%p2252_p10)
}
  0x82   : > { %s2256_s10 = scalar_lea.vmem %s2619_s11, 3840  ;;  %s2384_s5 = smov [#allocation3]  }
  0x83   : > { %p2257_p5 = scmp.ne.s32.totalorder %s2619_s11, %s2256_s10  ;;  %s2261_s28 = sshll.u32 %s2384_s5, 4  ;;  %s2262_s28 = int_to_ptr.vmem [resolvable:$false] %s2261_s28 }
  0x84   : > { %s2263_s4 = scalar_lea.vmem %s2262_s28, 7680  ;;  %p2264_p1 = scmp.lt.s32.totalorder %s2619_s11, %s2262_s28 }
  0x85   : > { %p2259_p7 = pnand %p2257_p5, %p2243_p13  ;;  %p2265_p2 = scmp.lt.s32.totalorder %s2263_s4, %s2256_s10 }
  0x87   : > { %p2260_p11 = pneg %p2259_p7  ;;  %p2266_p8 = por %p2265_p2, %p2264_p1 }
  0x89   : > { %p2267_p12 = pnand %p2266_p8, %p2260_p11 }
  0x8b   : > { %2270 = shalt.err (!%p2267_p12)
}
  0x8c   : > { %s3557_s15 = smov 8   ;;  %s3558_s9 = smov 128  }
  0x8d   : > { %2056 = dma.hbm_to_vmem [thread:$0]  (!%p2612_p9), %s2624_s14, 3840, %s2619_s11, %s2626_s7, %s3558_s9, %s3558_s9, %s3557_s15  }
  0x8e   : > { %p3559_p13 = scmp.ne.s32.totalorder %s3549_s29, 0 }
  0x8f   : > { %s2660_s13 = sand.u32 (!%p3559_p13), 1, %s2353_s16   ;;  %p3560_p4 = scmp.ne.s32.totalorder (!%p3559_p13), %s3546_s27, 0 }
  0x90   : > { %231 = sbr.rel (%p3559_p13) target bundleno = 914 (0x392), region = 36  ;;  %s234_s1 = scalar_lea.sflag (!%p3559_p13), [#allocation4], %s2660_s13 }
  0x91   : > { %s2026_s30 = smul.u32 (!%p3559_p13), 240, %s2660_s13 }
  0x93   : > { %s2664_s2 = scalar_lea.vmem (!%p3559_p13), [#allocation3], %s2026_s30 }
  0x97   : > { %2332 = dma.done.wait (%p3560_p4), %s234_s1, 3840  }
  0x98   : > { %2334 = vsyncadd (%p3560_p4), %s234_s1, 4294963456  ;;  %p3561_p9 = scmp.ne.s32.totalorder %s3544_s25, 0 }
  0x9a   : > { %2336 = dma.done.wait (%p3561_p9), [#allocation7], 656  }
  0x9b   : > { %2338 = vsyncadd (%p3561_p9), [#allocation7], 4294966640 }
  0x9c   : > { %2340 = dma.done.wait (%p3561_p9), [#allocation10], 16  }
  0x9d   : > { %2342 = vsyncadd (%p3561_p9), [#allocation10], 4294967280  ;;  %v404_v0 = vld [vmem:[%s2664_s2 + $0x2] sm:$0xff]  ;;  %s2385_s27 = smov 8   ;;  %s2386_s29 = smov 4   ;;  %vm290_vm0 = vcmask 31744  }
  0x9e   : > { %v307_v1 = vld [vmem:[%s2664_s2 + $0x1] sm:$0xff]  ;;  %436 = vrot.lane.b32.xlu1 %v404_v0, %s2385_s27  ;;  %v405_v3 = vld [vmem:[%s2664_s2 + $0xa] sm:$0xff]  ;;  %v1834_v5 = vld [vmem:[%s2664_s2 + $0x18] sm:$0xff]  ;;  %s2387_s25 = smov 12   ;;  %s2388_s11 = smov 16   ;;  %vm1155_vm1 = vcmask 1043456  }
  0x9f   : > { %339 = vrot.lane.b32.xlu0 %v307_v1, %s2386_s29  ;;  %v1835_v2 = vld [vmem:[%s2664_s2 + $0x20] sm:$0xff]  ;;  %v308_v4 = vld [vmem:[%s2664_s2 + $0x9] sm:$0xff]  ;;  %293 = vst.msk [vmem:[#allocation2 + $0x10] sm:$0xff] %vm290_vm0, %v1834_v5  ;;  %v1883_v7 = vld [vmem:[%s2664_s2 + $0x38] sm:$0xff]  ;;  %s2389_s8 = smov 20   ;;  %s2390_s14 = smov 24  }
  0xa0   : > { %294 = vst.msk [vmem:[#allocation2 + $0x18] sm:$0xff] %vm290_vm0, %v1835_v2  ;;  %v1882_v6 = vld [vmem:[%s2664_s2 + $0x30] sm:$0xff]  ;;  %v2694_v8 = vld [vmem:[%s2664_s2 + $0x78] sm:$0xff]  ;;  %v2697_v9 = vld [vmem:[%s2664_s2 + $0x80] sm:$0xff]  ;;  %s2391_s7 = smov 28   ;;  %s2392_s12 = smov 32  }
  0xa1   : > { %295 = vst.msk [vmem:[#allocation2 + $0x20] sm:$0xff] %vm290_vm0, %v1882_v6  ;;  %296 = vst.msk [vmem:[#allocation2 + $0x28] sm:$0xff] %vm290_vm0, %v1883_v7  ;;  %v309_v10 = vld [vmem:[%s2664_s2 + $0x19] sm:$0xff]  ;;  %v2708_v11 = vld [vmem:[%s2664_s2 + $0x90] sm:$0xff]  ;;  %vm387_vm2 = vcmask 64544   ;;  %vm484_vm3 = vcmask 97344  }
  0xa2   : > { %438 = vrot.lane.b32.xlu1 %v405_v3, %s2385_s27  ;;  %301 = vst.msk [vmem:[#allocation2 + $0x50] sm:$0xff] %vm290_vm0, %v2694_v8  ;;  %302 = vst.msk [vmem:[#allocation2 + $0x58] sm:$0xff] %vm290_vm0, %v2697_v9  ;;  %v2711_v12 = vld [vmem:[%s2664_s2 + $0x48] sm:$0xff]  ;;  %v2714_v13 = vld [vmem:[%s2664_s2 + $0x98] sm:$0xff]  ;;  %vm582_vm4 = vcmask 130144   ;;  %vm679_vm5 = vcmask 162944  }
  0xa3   : > { %341 = vrot.lane.b32.xlu0 %v308_v4, %s2386_s29  ;;  %v2717_v14 = vld [vmem:[%s2664_s2 + $0x50] sm:$0xff]  ;;  %303 = vst.msk [vmem:[#allocation2 + $0x60] sm:$0xff] %vm290_vm0, %v2708_v11  ;;  %297 = vst.msk [vmem:[#allocation2 + $0x30] sm:$0xff] %vm290_vm0, %v2711_v12  ;;  %v274_v15 = vld [vmem:[%s2664_s2] sm:$0xff]  ;;  %vm776_vm6 = vcmask 195744   ;;  %vm874_vm7 = vcmask 228544  }
  0xa4   : > { %304 = vst.msk [vmem:[#allocation2 + $0x68] sm:$0xff] %vm290_vm0, %v2714_v13  ;;  %298 = vst.msk [vmem:[#allocation2 + $0x38] sm:$0xff] %vm290_vm0, %v2717_v14  ;;  %v275_v16 = vld [vmem:[%s2664_s2 + $0x8] sm:$0xff]  ;;  %v2738_v19 = vld [vmem:[%s2664_s2 + $0x60] sm:$0xff]  ;;  %vm971_vm8 = vcmask 261344   ;;  %vm1068_vm9 = vcmask 294144  }
  0xa5   : > { %291 = vst.msk [vmem:[#allocation2] sm:$0xff] %vm290_vm0, %v274_v15  ;;  %v1851_v17 = vld [vmem:[%s2664_s2 + $0x21] sm:$0xff]  ;;  %292 = vst.msk [vmem:[#allocation2 + $0x8] sm:$0xff] %vm290_vm0, %v275_v16  ;;  %v2759_v23 = vld [vmem:[%s2664_s2 + $0x69] sm:$0xff]  ;;  %vm1106_vm10 = vcmask 293888   ;;  %vm1375_vm11 = vcmask 1041409  }
  0xa6   : > { %536 = vrot.lane.b32.xlu1 %v1835_v2, %s2387_s25  ;;  %v2734_v18 = vld [vmem:[%s2664_s2 + $0x61] sm:$0xff]  ;;  %299 = vst.msk [vmem:[#allocation2 + $0x40] sm:$0xff] %vm290_vm0, %v2738_v19  ;;  %v2772_v26 = vld [vmem:[%s2664_s2 + $0xb0] sm:$0xff]  ;;  %v1899_v29 = vld [vmem:[%s2664_s2 + $0x39] sm:$0xff]  ;;  %vm1378_vm12 = vcmask 1042434   ;;  %vm1381_vm13 = vcmask 1043459  }
  0xa7   : > { %534 = vrot.lane.b32.xlu0 %v1834_v5, %s2387_s25  ;;  %v2743_v20 = vld [vmem:[%s2664_s2 + $0x68] sm:$0xff]  ;;  %v1866_v21 = vld [vmem:[%s2664_s2 + $0x1a] sm:$0xff]  ;;  %306 = vst.msk [vmem:[#allocation2 + $0x78] sm:$0xff] %vm290_vm0, %v2772_v26  ;;  %v1898_v28 = vld [vmem:[%s2664_s2 + $0x31] sm:$0xff]  ;;  %vm1384_vm14 = vcmask 1044484   ;;  %vm1387_vm15 = vcmask 1045509  }
  0xa8   : > { %300 = vst.msk [vmem:[#allocation2 + $0x48] sm:$0xff] %vm290_vm0, %v2743_v20  ;;  %v2752_v22 = vld [vmem:[%s2664_s2 + $0xa8] sm:$0xff]  ;;  %v2795_v30 = vld [vmem:[%s2664_s2 + $0x79] sm:$0xff]  ;;  %v1906_v43 = vld [vmem:[%s2664_s2 + $0x91] sm:$0xff]  ;;  %s2393_s10 = smov 88   ;;  %s2394_s5 = smov 64  }
  0xa9   : > { %305 = vst.msk [vmem:[#allocation2 + $0x70] sm:$0xff] %vm290_vm0, %v2752_v22  ;;  %v1867_v24 = vld [vmem:[%s2664_s2 + $0x22] sm:$0xff]  ;;  %v2779_v27 = vld [vmem:[%s2664_s2 + $0x6a] sm:$0xff]  ;;  %v1914_v34 = vld [vmem:[%s2664_s2 + $0x32] sm:$0xff]  ;;  %vm1390_vm0 = vcmask 1046534   ;;  %s2395_s28 = smov 80  }
  0xaa   : > { %343 = vrot.lane.b32.xlu1 %v309_v10, %s2386_s29  ;;  %v2766_v25 = vld [vmem:[%s2664_s2 + $0x62] sm:$0xff]  ;;  %v1915_v40 = vld [vmem:[%s2664_s2 + $0x3a] sm:$0xff]  ;;  %v1901_v46 = vld [vmem:[%s2664_s2 + $0x51] sm:$0xff]  ;;  %s2396_s4 = smov 72   ;;  %s2397_s15 = smov 48  }
  0xab   : > { %631 = vrot.lane.b32.xlu0 %v309_v10, %s2388_s11  ;;  %v1101_v31 = vld [vmem:[#allocation6] sm:$0xff]  ;;  %v1102_v32 = vld [vmem:[#allocation6 + $0x8] sm:$0xff]  ;;  %v1103_v35 = vld [vmem:[#allocation6 + $0x10] sm:$0xff]  ;;  %s2398_s9 = smov 40   ;;  %s2399_s30 = smov 96  }
  0xac   : > { %v2009_v33 = vpack.c.bf16 %v1102_v32, %v1101_v31  ;;  %v1104_v36 = vld [vmem:[#allocation6 + $0x18] sm:$0xff]  ;;  %v1105_v38 = vld [vmem:[#allocation6 + $0x20] sm:$0xf]  ;;  %s2400_s1 = smov 56  }
  0xad   : > { %v2013_v37 = vpack.c.bf16 %v1104_v36, %v1103_v35  ;;  %v2807_v39 = vld [vmem:[%s2664_s2 + $0x81] sm:$0xff]  ;;  %v1900_v44 = vld [vmem:[%s2664_s2 + $0x49] sm:$0xff]  ;;  %v1907_v45 = vld [vmem:[%s2664_s2 + $0x99] sm:$0xff] }
  0xae   : > { %633 = vrot.lane.b32.xlu1 %v1851_v17, %s2388_s11  ;;  %2010 = vmatprep.subr.bf16.mxu0 %v2009_v33  ;;  %v2814_v41 = vld [vmem:[%s2664_s2 + $0x7a] sm:$0xff]  ;;  %v2826_v42 = vld [vmem:[%s2664_s2 + $0x82] sm:$0xff]  ;;  %v1922_v47 = vld [vmem:[%s2664_s2 + $0x92] sm:$0xff] }
  0xaf   : > { %355 = vrot.lane.b32.xlu0 %v2734_v18, %s2386_s29  ;;  %2017 = vmatprep.subr.bf16.mxu1 %v2009_v33  ;;  %v1916_v48 = vld [vmem:[%s2664_s2 + $0x4a] sm:$0xff]  ;;  %v1923_v57 = vld [vmem:[%s2664_s2 + $0x9a] sm:$0xff]  ;;  %v1917_v58 = vld [vmem:[%s2664_s2 + $0x52] sm:$0xff] }
  0xb0   : > { %2012 = vmatpush3.bf16.msra.mxu0 %v2009_v33  ;;  %2020 = vmatpush3.bf16.msra.mxu1 %v2009_v33 }
  0xb1   : > { %2014 = vmatprep.subr.bf16.mxu0 %v2013_v37  ;;  %2018 = vmatprep.subr.bf16.mxu1 %v2013_v37 }
  0xb2   : > { %345 = vrot.lane.b32.xlu1 %v1851_v17, %s2386_s29 }
  0xb3   : > { %728 = vrot.lane.b32.xlu0 %v1866_v21, %s2389_s8 }
  0xb4   : > { %2016 = vmatpush3.bf16.msra.mxu0 %v2013_v37  ;;  %2021 = vmatpush3.bf16.msra.mxu1 %v2013_v37 }
  0xb5   : > { %1983 = vmatprep.subr.msk.mxu0 %vm1155_vm1, %v1105_v38  ;;  %2019 = vmatprep.subr.msk.mxu1 %vm1155_vm1, %v1105_v38 }
  0xb6   : > { %440 = vrot.lane.b32.xlu1 %v1866_v21, %s2385_s27 }
  0xb7   : > { %357 = vrot.lane.b32.xlu0 %v2759_v23, %s2386_s29 }
  0xb8   : > { %1984 = vmatpush3.msk.msra.mxu0 %vm1155_vm1, %v1105_v38  ;;  %2022 = vmatpush3.msk.msra.mxu1 %vm1155_vm1, %v1105_v38  ;;  %vm1393_vm1 = vcmask 1047559  }
  0xba   : > { %730 = vrot.lane.b32.xlu1 %v1867_v24, %s2389_s8 }
  0xbb   : > { %452 = vrot.lane.b32.xlu0 %v2766_v25, %s2385_s27 }
  0xbe   : > { %442 = vrot.lane.b32.xlu1 %v1867_v24, %s2385_s27 }
  0xbf   : > { %826 = vrot.lane.b32.xlu0 %v1882_v6, %s2390_s14 }
  0xc2   : > { %538 = vrot.lane.b32.xlu1 %v1882_v6, %s2387_s25 }
  0xc3   : > { %454 = vrot.lane.b32.xlu0 %v2779_v27, %s2385_s27 }
  0xc6   : > { %828 = vrot.lane.b32.xlu1 %v1883_v7, %s2390_s14 }
  0xc7   : > { %550 = vrot.lane.b32.xlu0 %v2694_v8, %s2387_s25 }
  0xca   : > { %540 = vrot.lane.b32.xlu1 %v1883_v7, %s2387_s25 }
  0xcb   : > { %923 = vrot.lane.b32.xlu0 %v1898_v28, %s2391_s7 }
  0xce   : > { %635 = vrot.lane.b32.xlu1 %v1898_v28, %s2388_s11 }
  0xcf   : > { %552 = vrot.lane.b32.xlu0 %v2697_v9, %s2387_s25 }
  0xd2   : > { %925 = vrot.lane.b32.xlu1 %v1899_v29, %s2391_s7 }
  0xd3   : > { %647 = vrot.lane.b32.xlu0 %v2795_v30, %s2388_s11 }
  0xd6   : > { %347 = vrot.lane.b32.xlu1 %v1898_v28, %s2386_s29 }
  0xd7   : > { %1020 = vrot.lane.b32.xlu0 %v1914_v34, %s2392_s12 }
  0xda   : > { %637 = vrot.lane.b32.xlu1 %v1899_v29, %s2388_s11 }
  0xdb   : > { %359 = vrot.lane.b32.xlu0 %v2795_v30, %s2386_s29 }
  0xde   : > { %732 = vrot.lane.b32.xlu1 %v1914_v34, %s2389_s8 }
  0xdf   : > { %649 = vrot.lane.b32.xlu0 %v2807_v39, %s2388_s11 }
  0xe2   : > { %1022 = vrot.lane.b32.xlu1 %v1915_v40, %s2392_s12 }
  0xe3   : > { %744 = vrot.lane.b32.xlu0 %v2814_v41, %s2389_s8 }
  0xe6   : > { %361 = vrot.lane.b32.xlu1 %v2807_v39, %s2386_s29 }
  0xe7   : > { %349 = vrot.lane.b32.xlu0 %v1899_v29, %s2386_s29 }
  0xea   : > { %456 = vrot.lane.b32.xlu1 %v2814_v41, %s2385_s27 }
  0xeb   : > { %444 = vrot.lane.b32.xlu0 %v1914_v34, %s2385_s27 }
  0xee   : > { %746 = vrot.lane.b32.xlu1 %v2826_v42, %s2389_s8 }
  0xef   : > { %734 = vrot.lane.b32.xlu0 %v1915_v40, %s2389_s8 }
  0xf2   : > { %842 = vrot.lane.b32.xlu1 %v2708_v11, %s2390_s14 }
  0xf3   : > { %830 = vrot.lane.b32.xlu0 %v2711_v12, %s2390_s14 }
  0xf6   : > { %458 = vrot.lane.b32.xlu1 %v2826_v42, %s2385_s27 }
  0xf7   : > { %446 = vrot.lane.b32.xlu0 %v1915_v40, %s2385_s27 }
  0xfa   : > { %554 = vrot.lane.b32.xlu1 %v2708_v11, %s2387_s25 }
  0xfb   : > { %542 = vrot.lane.b32.xlu0 %v2711_v12, %s2387_s25 }
  0xfe   : > { %844 = vrot.lane.b32.xlu1 %v2714_v13, %s2390_s14 }
  0xff   : > { %832 = vrot.lane.b32.xlu0 %v2717_v14, %s2390_s14 }
 0x102   : > { %939 = vrot.lane.b32.xlu1 %v1906_v43, %s2391_s7 }
 0x103   : > { %927 = vrot.lane.b32.xlu0 %v1900_v44, %s2391_s7 }
 0x106   : > { %556 = vrot.lane.b32.xlu1 %v2714_v13, %s2387_s25  ;;  %v1908_v13 = vld [vmem:[%s2664_s2 + $0xa9] sm:$0xff] }
 0x107   : > { %544 = vrot.lane.b32.xlu0 %v2717_v14, %s2387_s25 }
 0x10a   : > { %651 = vrot.lane.b32.xlu1 %v1906_v43, %s2388_s11 }
 0x10b   : > { %639 = vrot.lane.b32.xlu0 %v1900_v44, %s2388_s11 }
 0x10e   : > { %941 = vrot.lane.b32.xlu1 %v1907_v45, %s2391_s7 }
 0x10f   : > { %929 = vrot.lane.b32.xlu0 %v1901_v46, %s2391_s7 }
 0x110   : > { %v437_v49 = vpop.permute.xlu1 %436 }
 0x111   : > { %v340_v50 = vpop.permute.xlu0 %339 }
 0x112   : > { %388 = vst.msk [vmem:[#allocation2] sm:$0xff] %vm387_vm2, %v340_v50  ;;  %1036 = vrot.lane.b32.xlu1 %v1922_v47, %s2392_s12 }
 0x113   : > { %1024 = vrot.lane.b32.xlu0 %v1916_v48, %s2392_s12  ;;  %485 = vst.msk [vmem:[#allocation2] sm:$0xff] %vm484_vm3, %v437_v49 }
 0x114   : > { %v439_v51 = vpop.permute.xlu1 %438 }
 0x115   : > { %v342_v52 = vpop.permute.xlu0 %341 }
 0x116   : > { %389 = vst.msk [vmem:[#allocation2 + $0x8] sm:$0xff] %vm387_vm2, %v342_v52  ;;  %363 = vrot.lane.b32.xlu1 %v1906_v43, %s2386_s29  ;;  %v1910_v52 = vld [vmem:[%s2664_s2 + $0xc1] sm:$0xff] }
 0x117   : > { %351 = vrot.lane.b32.xlu0 %v1900_v44, %s2386_s29  ;;  %486 = vst.msk [vmem:[#allocation2 + $0x8] sm:$0xff] %vm484_vm3, %v439_v51 }
 0x118   : > { %v537_v53 = vpop.permute.xlu1 %536 }
 0x119   : > { %v535_v54 = vpop.permute.xlu0 %534  ;;  %584 = vst.msk [vmem:[#allocation2 + $0x8] sm:$0xff] %vm582_vm4, %v537_v53 }
 0x11a   : > { %583 = vst.msk [vmem:[#allocation2] sm:$0xff] %vm582_vm4, %v535_v54  ;;  %653 = vrot.lane.b32.xlu1 %v1907_v45, %s2388_s11 }
 0x11b   : > { %641 = vrot.lane.b32.xlu0 %v1901_v46, %s2388_s11 }
 0x11c   : > { %v344_v55 = vpop.permute.xlu1 %343 }
 0x11d   : > { %v632_v56 = vpop.permute.xlu0 %631  ;;  %390 = vst.msk [vmem:[#allocation2 + $0x10] sm:$0xff] %vm387_vm2, %v344_v55 }
 0x11e   : > { %680 = vst.msk [vmem:[#allocation2] sm:$0xff] %vm679_vm5, %v632_v56  ;;  %748 = vrot.lane.b32.xlu1 %v1922_v47, %s2389_s8 }
 0x11f   : > { %736 = vrot.lane.b32.xlu0 %v1916_v48, %s2389_s8 }
 0x120   : > { %v634_v59 = vpop.permute.xlu1 %633 }
 0x121   : > { %v356_v60 = vpop.permute.xlu0 %355  ;;  %681 = vst.msk [vmem:[#allocation2 + $0x8] sm:$0xff] %vm679_vm5, %v634_v59 }
 0x122   : > { %396 = vst.msk [vmem:[#allocation2 + $0x40] sm:$0xff] %vm387_vm2, %v356_v60  ;;  %1038 = vrot.lane.b32.xlu1 %v1923_v57, %s2392_s12 }
 0x123   : > { %1026 = vrot.lane.b32.xlu0 %v1917_v58, %s2392_s12 }
 0x124   : > { %v346_v61 = vpop.permute.xlu1 %345 }
 0x125   : > { %v729_v62 = vpop.permute.xlu0 %728  ;;  %391 = vst.msk [vmem:[#allocation2 + $0x18] sm:$0xff] %vm387_vm2, %v346_v61 }
 0x126   : > { %777 = vst.msk [vmem:[#allocation2] sm:$0xff] %vm776_vm6, %v729_v62  ;;  %365 = vrot.lane.b32.xlu1 %v1907_v45, %s2386_s29 }
 0x127   : > { %353 = vrot.lane.b32.xlu0 %v1901_v46, %s2386_s29  ;;  %v1894_v46 = vld [vmem:[%s2664_s2 + $0xc0] sm:$0xff] }
 0x128   : > { %v441_v63 = vpop.permute.xlu1 %440 }
 0x129   : > { %v358_v0 = vpop.permute.xlu0 %357  ;;  %487 = vst.msk [vmem:[#allocation2 + $0x10] sm:$0xff] %vm484_vm3, %v441_v63 }
 0x12a   : > { %397 = vst.msk [vmem:[#allocation2 + $0x48] sm:$0xff] %vm387_vm2, %v358_v0  ;;  %460 = vrot.lane.b32.xlu1 %v1922_v47, %s2385_s27 }
 0x12b   : > { %448 = vrot.lane.b32.xlu0 %v1916_v48, %s2385_s27 }
 0x12c   : > { %v731_v1 = vpop.permute.xlu1 %730 }
 0x12d   : > { %v453_v2 = vpop.permute.xlu0 %452  ;;  %778 = vst.msk [vmem:[#allocation2 + $0x8] sm:$0xff] %vm776_vm6, %v731_v1 }
 0x12e   : > { %493 = vst.msk [vmem:[#allocation2 + $0x40] sm:$0xff] %vm484_vm3, %v453_v2  ;;  %750 = vrot.lane.b32.xlu1 %v1923_v57, %s2389_s8  ;;  %v1897_v2 = vld [vmem:[%s2664_s2 + $0xe0] sm:$0xff] }
 0x12f   : > { %738 = vrot.lane.b32.xlu0 %v1917_v58, %s2389_s8 }
 0x130   : > { %v443_v3 = vpop.permute.xlu1 %442 }
 0x131   : > { %v827_v4 = vpop.permute.xlu0 %826  ;;  %488 = vst.msk [vmem:[#allocation2 + $0x18] sm:$0xff] %vm484_vm3, %v443_v3 }
 0x132   : > { %875 = vst.msk [vmem:[#allocation2] sm:$0xff] %vm874_vm7, %v827_v4  ;;  %846 = vrot.lane.b32.xlu1 %v2752_v22, %s2390_s14 }
 0x133   : > { %834 = vrot.lane.b32.xlu0 %v2738_v19, %s2390_s14 }
 0x134   : > { %v539_v5 = vpop.permute.xlu1 %538 }
 0x135   : > { %v455_v6 = vpop.permute.xlu0 %454  ;;  %585 = vst.msk [vmem:[#allocation2 + $0x10] sm:$0xff] %vm582_vm4, %v539_v5  ;;  %v1912_v5 = vld [vmem:[%s2664_s2 + $0xd9] sm:$0xff] }
 0x136   : > { %494 = vst.msk [vmem:[#allocation2 + $0x48] sm:$0xff] %vm484_vm3, %v455_v6  ;;  %462 = vrot.lane.b32.xlu1 %v1923_v57, %s2385_s27  ;;  %v1913_v6 = vld [vmem:[%s2664_s2 + $0xe1] sm:$0xff] }
 0x137   : > { %450 = vrot.lane.b32.xlu0 %v1917_v58, %s2385_s27  ;;  %v1926_v58 = vld [vmem:[%s2664_s2 + $0xc2] sm:$0xff] }
 0x138   : > { %v829_v7 = vpop.permute.xlu1 %828 }
 0x139   : > { %v551_v10 = vpop.permute.xlu0 %550  ;;  %876 = vst.msk [vmem:[#allocation2 + $0x8] sm:$0xff] %vm874_vm7, %v829_v7 }
 0x13a   : > { %591 = vst.msk [vmem:[#allocation2 + $0x40] sm:$0xff] %vm582_vm4, %v551_v10  ;;  %558 = vrot.lane.b32.xlu1 %v2752_v22, %s2387_s25  ;;  %v1909_v22 = vld [vmem:[%s2664_s2 + $0xb1] sm:$0xff] }
 0x13b   : > { %546 = vrot.lane.b32.xlu0 %v2738_v19, %s2387_s25 }
 0x13c   : > { %v541_v11 = vpop.permute.xlu1 %540 }
 0x13d   : > { %v924_v12 = vpop.permute.xlu0 %923  ;;  %586 = vst.msk [vmem:[#allocation2 + $0x18] sm:$0xff] %vm582_vm4, %v541_v11  ;;  %v1928_v11 = vld [vmem:[%s2664_s2 + $0xda] sm:$0xff] }
 0x13e   : > { %972 = vst.msk [vmem:[#allocation2] sm:$0xff] %vm971_vm8, %v924_v12  ;;  %848 = vrot.lane.b32.xlu1 %v2772_v26, %s2390_s14  ;;  %v1929_v12 = vld [vmem:[%s2664_s2 + $0xe2] sm:$0xff] }
 0x13f   : > { %836 = vrot.lane.b32.xlu0 %v2743_v20, %s2390_s14 }
 0x140   : > { %v636_v14 = vpop.permute.xlu1 %635 }
 0x141   : > { %v553_v15 = vpop.permute.xlu0 %552  ;;  %682 = vst.msk [vmem:[#allocation2 + $0x10] sm:$0xff] %vm679_vm5, %v636_v14 }
 0x142   : > { %592 = vst.msk [vmem:[#allocation2 + $0x48] sm:$0xff] %vm582_vm4, %v553_v15  ;;  %943 = vrot.lane.b32.xlu1 %v1908_v13, %s2391_s7 }
 0x143   : > { %931 = vrot.lane.b32.xlu0 %v2734_v18, %s2391_s7 }
 0x144   : > { %v926_v16 = vpop.permute.xlu1 %925 }
 0x145   : > { %v648_v17 = vpop.permute.xlu0 %647  ;;  %973 = vst.msk [vmem:[#allocation2 + $0x8] sm:$0xff] %vm971_vm8, %v926_v16 }
 0x146   : > { %688 = vst.msk [vmem:[#allocation2 + $0x40] sm:$0xff] %vm679_vm5, %v648_v17  ;;  %560 = vrot.lane.b32.xlu1 %v2772_v26, %s2387_s25 }
 0x147   : > { %548 = vrot.lane.b32.xlu0 %v2743_v20, %s2387_s25  ;;  %v1924_v20 = vld [vmem:[%s2664_s2 + $0xaa] sm:$0xff] }
 0x148   : > { %v348_v19 = vpop.permute.xlu1 %347 }
 0x149   : > { %v1021_v21 = vpop.permute.xlu0 %1020  ;;  %392 = vst.msk [vmem:[#allocation2 + $0x20] sm:$0xff] %vm387_vm2, %v348_v19 }
 0x14a   : > { %1069 = vst.msk [vmem:[#allocation2] sm:$0xff] %vm1068_vm9, %v1021_v21  ;;  %655 = vrot.lane.b32.xlu1 %v1908_v13, %s2388_s11 }
 0x14b   : > { %643 = vrot.lane.b32.xlu0 %v2734_v18, %s2388_s11 }
 0x14c   : > { %v638_v24 = vpop.permute.xlu1 %637 }
 0x14d   : > { %v360_v28 = vpop.permute.xlu0 %359  ;;  %683 = vst.msk [vmem:[#allocation2 + $0x18] sm:$0xff] %vm679_vm5, %v638_v24 }
 0x14e   : > { %398 = vst.msk [vmem:[#allocation2 + $0x50] sm:$0xff] %vm387_vm2, %v360_v28  ;;  %945 = vrot.lane.b32.xlu1 %v1909_v22, %s2391_s7 }
 0x14f   : > { %933 = vrot.lane.b32.xlu0 %v2759_v23, %s2391_s7 }
 0x150   : > { %v733_v26 = vpop.permute.xlu1 %732 }
 0x151   : > { %v650_v29 = vpop.permute.xlu0 %649  ;;  %v1085_v31 = vld [vmem:[#allocation2] sm:$0xff]  ;;  %779 = vst.msk [vmem:[#allocation2 + $0x10] sm:$0xff] %vm776_vm6, %v733_v26 }
 0x152   : > { %689 = vst.msk [vmem:[#allocation2 + $0x48] sm:$0xff] %vm679_vm5, %v650_v29  ;;  %1985 = vmatprep.mubr.msk.f32.mxu0 %vm1106_vm10, %v1085_v31  ;;  %1040 = vrot.lane.b32.xlu1 %v1924_v20, %s2392_s12 }
 0x153   : > { %1028 = vrot.lane.b32.xlu0 %v2766_v25, %s2392_s12 }
 0x154   : > { %v1023_v18 = vpop.permute.xlu1 %1022 }
 0x155   : > { %v745_v32 = vpop.permute.xlu0 %744  ;;  %1070 = vst.msk [vmem:[#allocation2 + $0x8] sm:$0xff] %vm1068_vm9, %v1023_v18 }
 0x156   : > { %785 = vst.msk [vmem:[#allocation2 + $0x40] sm:$0xff] %vm776_vm6, %v745_v32  ;;  %645 = vrot.lane.b32.xlu1 %v2759_v23, %s2388_s11  ;;  %v1925_v23 = vld [vmem:[%s2664_s2 + $0xb2] sm:$0xff] }
 0x157   : > { %367 = vrot.lane.b32.xlu0 %v1908_v13, %s2386_s29 }
 0x158   : > { %v362_v33 = vpop.permute.xlu1 %361 }
 0x159   : > { %v350_v34 = vpop.permute.xlu0 %349  ;;  %399 = vst.msk [vmem:[#allocation2 + $0x58] sm:$0xff] %vm387_vm2, %v362_v33 }
 0x15a   : > { %393 = vst.msk [vmem:[#allocation2 + $0x28] sm:$0xff] %vm387_vm2, %v350_v34  ;;  %740 = vrot.lane.b32.xlu1 %v2766_v25, %s2389_s8 }
 0x15b   : > { %657 = vrot.lane.b32.xlu0 %v1909_v22, %s2388_s11 }
 0x15c   : > { %v457_v35 = vpop.permute.xlu1 %456  ;;  %v1086_v37 = vld [vmem:[#allocation2 + $0x8] sm:$0xff] }
 0x15d   : > { %v445_v36 = vpop.permute.xlu0 %444  ;;  %495 = vst.msk [vmem:[#allocation2 + $0x50] sm:$0xff] %vm484_vm3, %v457_v35  ;;  %1986 = vmatmul.mubr.msk.f32.vlgmr.msra.gmra.mrb[0].mxu0 %vm1106_vm10, %v1086_v37 }
 0x15e   : > { %489 = vst.msk [vmem:[#allocation2 + $0x20] sm:$0xff] %vm484_vm3, %v445_v36  ;;  %1030 = vrot.lane.b32.xlu1 %v2779_v27, %s2392_s12 }
 0x15f   : > { %752 = vrot.lane.b32.xlu0 %v1924_v20, %s2389_s8 }
 0x160   : > { %v747_v38 = vpop.permute.xlu1 %746 }
 0x161   : > { %v735_v40 = vpop.permute.xlu0 %734  ;;  %786 = vst.msk [vmem:[#allocation2 + $0x48] sm:$0xff] %vm776_vm6, %v747_v38 }
 0x162   : > { %780 = vst.msk [vmem:[#allocation2 + $0x18] sm:$0xff] %vm776_vm6, %v735_v40  ;;  %369 = vrot.lane.b32.xlu1 %v1909_v22, %s2386_s29  ;;  %s2403_s29 = smov 120  }
 0x163   : > { %1042 = vrot.lane.b32.xlu0 %v1925_v23, %s2392_s12 }
 0x164   : > { %v843_v25 = vpop.permute.xlu1 %842 }
 0x165   : > { %v831_v43 = vpop.permute.xlu0 %830  ;;  %883 = vst.msk [vmem:[#allocation2 + $0x40] sm:$0xff] %vm874_vm7, %v843_v25 }
 0x166   : > { %877 = vst.msk [vmem:[#allocation2 + $0x10] sm:$0xff] %vm874_vm7, %v831_v43  ;;  %742 = vrot.lane.b32.xlu1 %v2779_v27, %s2389_s8 }
 0x167   : > { %464 = vrot.lane.b32.xlu0 %v1924_v20, %s2385_s27 }
 0x168   : > { %v459_v44 = vpop.permute.xlu1 %458 }
 0x169   : > { %v447_v45 = vpop.permute.xlu0 %446  ;;  %496 = vst.msk [vmem:[#allocation2 + $0x58] sm:$0xff] %vm484_vm3, %v459_v44 }
 0x16a   : > { %490 = vst.msk [vmem:[#allocation2 + $0x28] sm:$0xff] %vm484_vm3, %v447_v45  ;;  %838 = vrot.lane.b32.xlu1 %v2694_v8, %s2390_s14  ;;  %v1895_v8 = vld [vmem:[%s2664_s2 + $0xc8] sm:$0xff] }
 0x16b   : > { %754 = vrot.lane.b32.xlu0 %v1925_v23, %s2389_s8 }
 0x16c   : > { %v555_v47 = vpop.permute.xlu1 %554 }
 0x16d   : > { %v543_v48 = vpop.permute.xlu0 %542  ;;  %593 = vst.msk [vmem:[#allocation2 + $0x50] sm:$0xff] %vm582_vm4, %v555_v47 }
 0x16e   : > { %587 = vst.msk [vmem:[#allocation2 + $0x20] sm:$0xff] %vm582_vm4, %v543_v48  ;;  %466 = vrot.lane.b32.xlu1 %v1925_v23, %s2385_s27 }
 0x16f   : > { %850 = vrot.lane.b32.xlu0 %v1894_v46, %s2390_s14 }
 0x170   : > { %v845_v27 = vpop.permute.xlu1 %844 }
 0x171   : > { %v833_v49 = vpop.permute.xlu0 %832  ;;  %884 = vst.msk [vmem:[#allocation2 + $0x48] sm:$0xff] %vm874_vm7, %v845_v27 }
 0x172   : > { %878 = vst.msk [vmem:[#allocation2 + $0x18] sm:$0xff] %vm874_vm7, %v833_v49  ;;  %840 = vrot.lane.b32.xlu1 %v2697_v9, %s2390_s14 }
 0x173   : > { %562 = vrot.lane.b32.xlu0 %v1894_v46, %s2387_s25 }
 0x174   : > { %v940_v50 = vpop.permute.xlu1 %939 }
 0x175   : > { %v928_v51 = vpop.permute.xlu0 %927  ;;  %980 = vst.msk [vmem:[#allocation2 + $0x40] sm:$0xff] %vm971_vm8, %v940_v50 }
 0x176   : > { %974 = vst.msk [vmem:[#allocation2 + $0x10] sm:$0xff] %vm971_vm8, %v928_v51  ;;  %935 = vrot.lane.b32.xlu1 %v2795_v30, %s2391_s7  ;;  %v1911_v30 = vld [vmem:[%s2664_s2 + $0xc9] sm:$0xff] }
 0x177   : > { %852 = vrot.lane.b32.xlu0 %v1895_v8, %s2390_s14 }
 0x178   : > { %v557_v53 = vpop.permute.xlu1 %556 }
 0x179   : > { %v545_v54 = vpop.permute.xlu0 %544  ;;  %594 = vst.msk [vmem:[#allocation2 + $0x58] sm:$0xff] %vm582_vm4, %v557_v53 }
 0x17a   : > { %588 = vst.msk [vmem:[#allocation2 + $0x28] sm:$0xff] %vm582_vm4, %v545_v54  ;;  %564 = vrot.lane.b32.xlu1 %v1895_v8, %s2387_s25  ;;  %s1833_s25 = sshll.u32 %s2660_s13, 3 }
 0x17b   : > { %947 = vrot.lane.b32.xlu0 %v1910_v52, %s2391_s7 }
 0x17c   : > { %v652_v9 = vpop.permute.xlu1 %651 }
 0x17d   : > { %v640_v55 = vpop.permute.xlu0 %639  ;;  %690 = vst.msk [vmem:[#allocation2 + $0x50] sm:$0xff] %vm679_vm5, %v652_v9 }
 0x17e   : > { %684 = vst.msk [vmem:[#allocation2 + $0x20] sm:$0xff] %vm679_vm5, %v640_v55  ;;  %937 = vrot.lane.b32.xlu1 %v2807_v39, %s2391_s7 }
 0x17f   : > { %659 = vrot.lane.b32.xlu0 %v1910_v52, %s2388_s11 }
 0x180   : > { %v942_v56 = vpop.permute.xlu1 %941 }
 0x181   : > { %v930_v57 = vpop.permute.xlu0 %929  ;;  %981 = vst.msk [vmem:[#allocation2 + $0x48] sm:$0xff] %vm971_vm8, %v942_v56 }
 0x182   : > { %975 = vst.msk [vmem:[#allocation2 + $0x18] sm:$0xff] %vm971_vm8, %v930_v57  ;;  %1032 = vrot.lane.b32.xlu1 %v2814_v41, %s2392_s12  ;;  %v1927_v41 = vld [vmem:[%s2664_s2 + $0xca] sm:$0xff] }
 0x183   : > { %949 = vrot.lane.b32.xlu0 %v1911_v30, %s2391_s7 }
 0x184   : > { %v1037_v59 = vpop.permute.xlu1 %1036 }
 0x185   : > { %v1025_v60 = vpop.permute.xlu0 %1024  ;;  %1077 = vst.msk [vmem:[#allocation2 + $0x40] sm:$0xff] %vm1068_vm9, %v1037_v59 }
 0x186   : > { %1071 = vst.msk [vmem:[#allocation2 + $0x10] sm:$0xff] %vm1068_vm9, %v1025_v60  ;;  %661 = vrot.lane.b32.xlu1 %v1911_v30, %s2388_s11 }
 0x187   : > { %1044 = vrot.lane.b32.xlu0 %v1926_v58, %s2392_s12 }
 0x188   : > { %v364_v39 = vpop.permute.xlu1 %363 }
 0x189   : > { %v352_v61 = vpop.permute.xlu0 %351  ;;  %400 = vst.msk [vmem:[#allocation2 + $0x60] sm:$0xff] %vm387_vm2, %v364_v39 }
 0x18a   : > { %394 = vst.msk [vmem:[#allocation2 + $0x30] sm:$0xff] %vm387_vm2, %v352_v61  ;;  %1034 = vrot.lane.b32.xlu1 %v2826_v42, %s2392_s12  ;;  %v1896_v42 = vld [vmem:[%s2664_s2 + $0xd8] sm:$0xff]  ;;  %s2401_s2 = smov 112  }
 0x18b   : > { %756 = vrot.lane.b32.xlu0 %v1926_v58, %s2389_s8 }
 0x18c   : > { %v654_v62 = vpop.permute.xlu1 %653  ;;  %v1093_v1 = vld [vmem:[#allocation2 + $0x40] sm:$0xff] }
 0x18d   : > { %v642_v63 = vpop.permute.xlu0 %641  ;;  %v1087_v0 = vld [vmem:[#allocation2 + $0x10] sm:$0xff]  ;;  %691 = vst.msk [vmem:[#allocation2 + $0x58] sm:$0xff] %vm679_vm5, %v654_v62  ;;  %1997 = vmatprep.mubr.msk.f32.mxu1 %vm1106_vm10, %v1093_v1 }
 0x18e   : > { %685 = vst.msk [vmem:[#allocation2 + $0x28] sm:$0xff] %vm679_vm5, %v642_v63  ;;  %1988 = vmatprep.mubr.msk.f32.mxu0 %vm1106_vm10, %v1087_v0  ;;  %758 = vrot.lane.b32.xlu1 %v1927_v41, %s2389_s8 }
 0x18f   : > { %1046 = vrot.lane.b32.xlu0 %v1927_v41, %s2392_s12 }
 0x190   : > { %v749_v3 = vpop.permute.xlu1 %748 }
 0x191   : > { %v737_v4 = vpop.permute.xlu0 %736  ;;  %787 = vst.msk [vmem:[#allocation2 + $0x50] sm:$0xff] %vm776_vm6, %v749_v3 }
 0x192   : > { %781 = vst.msk [vmem:[#allocation2 + $0x20] sm:$0xff] %vm776_vm6, %v737_v4  ;;  %856 = vrot.lane.b32.xlu1 %v1897_v2, %s2390_s14 }
 0x193   : > { %854 = vrot.lane.b32.xlu0 %v1896_v42, %s2390_s14 }
 0x194   : > { %v1039_v7 = vpop.permute.xlu1 %1038 }
 0x195   : > { %v1027_v10 = vpop.permute.xlu0 %1026  ;;  %1078 = vst.msk [vmem:[#allocation2 + $0x48] sm:$0xff] %vm1068_vm9, %v1039_v7 }
 0x196   : > { %1072 = vst.msk [vmem:[#allocation2 + $0x18] sm:$0xff] %vm1068_vm9, %v1027_v10  ;;  %953 = vrot.lane.b32.xlu1 %v1913_v6, %s2391_s7 }
 0x197   : > { %951 = vrot.lane.b32.xlu0 %v1912_v5, %s2391_s7 }
 0x198   : > { %v366_v13 = vpop.permute.xlu1 %365 }
 0x199   : > { %v354_v14 = vpop.permute.xlu0 %353  ;;  %401 = vst.msk [vmem:[#allocation2 + $0x68] sm:$0xff] %vm387_vm2, %v366_v13 }
 0x19a   : > { %395 = vst.msk [vmem:[#allocation2 + $0x38] sm:$0xff] %vm387_vm2, %v354_v14  ;;  %1050 = vrot.lane.b32.xlu1 %v1929_v12, %s2392_s12 }
 0x19b   : > { %1048 = vrot.lane.b32.xlu0 %v1928_v11, %s2392_s12 }
 0x19c   : > { %v461_v15 = vpop.permute.xlu1 %460  ;;  %v1094_v19 = vld [vmem:[#allocation2 + $0x48] sm:$0xff] }
 0x19d   : > { %v449_v16 = vpop.permute.xlu0 %448  ;;  %v1088_v17 = vld [vmem:[#allocation2 + $0x18] sm:$0xff]  ;;  %497 = vst.msk [vmem:[#allocation2 + $0x60] sm:$0xff] %vm484_vm3, %v461_v15  ;;  %1998 = vmatmul.mubr.msk.f32.vlgmr.msra.gmra.mrb[0].mxu1 %vm1106_vm10, %v1094_v19 }
 0x19e   : > { %491 = vst.msk [vmem:[#allocation2 + $0x30] sm:$0xff] %vm484_vm3, %v449_v16  ;;  %1989 = vmatmul.mubr.msk.f32.gmra.mrb[2].mxu0 %vm1106_vm10, %v1088_v17 }
 0x1a0   : > { %v751_v21 = vpop.permute.xlu1 %750 }
 0x1a1   : > { %v739_v22 = vpop.permute.xlu0 %738  ;;  %788 = vst.msk [vmem:[#allocation2 + $0x58] sm:$0xff] %vm776_vm6, %v751_v21 }
 0x1a2   : > { %782 = vst.msk [vmem:[#allocation2 + $0x28] sm:$0xff] %vm776_vm6, %v739_v22 }
 0x1a4   : > { %v847_v24 = vpop.permute.xlu1 %846 }
 0x1a5   : > { %v835_v28 = vpop.permute.xlu0 %834  ;;  %885 = vst.msk [vmem:[#allocation2 + $0x50] sm:$0xff] %vm874_vm7, %v847_v24 }
 0x1a6   : > { %879 = vst.msk [vmem:[#allocation2 + $0x20] sm:$0xff] %vm874_vm7, %v835_v28 }
 0x1a8   : > { %v463_v20 = vpop.permute.xlu1 %462 }
 0x1a9   : > { %v451_v26 = vpop.permute.xlu0 %450  ;;  %498 = vst.msk [vmem:[#allocation2 + $0x68] sm:$0xff] %vm484_vm3, %v463_v20  ;;  %v3116_v20 = vld [vmem:[#allocation8] ss:$0 sm:$0xff] }
 0x1aa   : > { %492 = vst.msk [vmem:[#allocation2 + $0x38] sm:$0xff] %vm484_vm3, %v451_v26 }
 0x1ac   : > { %v559_v29 = vpop.permute.xlu1 %558 }
 0x1ad   : > { %v547_v31 = vpop.permute.xlu0 %546  ;;  %595 = vst.msk [vmem:[#allocation2 + $0x60] sm:$0xff] %vm582_vm4, %v559_v29  ;;  %v3119_v29 = vld [vmem:[#allocation9] ss:$0 sm:$0xff] }
 0x1ae   : > { %589 = vst.msk [vmem:[#allocation2 + $0x30] sm:$0xff] %vm582_vm4, %v547_v31 }
 0x1b0   : > { %v849_v18 = vpop.permute.xlu1 %848 }
 0x1b1   : > { %v837_v32 = vpop.permute.xlu0 %836  ;;  %886 = vst.msk [vmem:[#allocation2 + $0x58] sm:$0xff] %vm874_vm7, %v849_v18 }
 0x1b2   : > { %880 = vst.msk [vmem:[#allocation2 + $0x28] sm:$0xff] %vm874_vm7, %v837_v32 }
 0x1b4   : > { %v944_v33 = vpop.permute.xlu1 %943 }
 0x1b5   : > { %v932_v34 = vpop.permute.xlu0 %931  ;;  %982 = vst.msk [vmem:[#allocation2 + $0x50] sm:$0xff] %vm971_vm8, %v944_v33 }
 0x1b6   : > { %976 = vst.msk [vmem:[#allocation2 + $0x20] sm:$0xff] %vm971_vm8, %v932_v34 }
 0x1b8   : > { %v561_v35 = vpop.permute.xlu1 %560 }
 0x1b9   : > { %v549_v36 = vpop.permute.xlu0 %548  ;;  %596 = vst.msk [vmem:[#allocation2 + $0x68] sm:$0xff] %vm582_vm4, %v561_v35 }
 0x1ba   : > { %590 = vst.msk [vmem:[#allocation2 + $0x38] sm:$0xff] %vm582_vm4, %v549_v36 }
 0x1bc   : > { %v656_v37 = vpop.permute.xlu1 %655 }
 0x1bd   : > { %v644_v23 = vpop.permute.xlu0 %643  ;;  %692 = vst.msk [vmem:[#allocation2 + $0x60] sm:$0xff] %vm679_vm5, %v656_v37 }
 0x1be   : > { %686 = vst.msk [vmem:[#allocation2 + $0x30] sm:$0xff] %vm679_vm5, %v644_v23 }
 0x1c0   : > { %v946_v38 = vpop.permute.xlu1 %945 }
 0x1c1   : > { %v934_v40 = vpop.permute.xlu0 %933  ;;  %983 = vst.msk [vmem:[#allocation2 + $0x58] sm:$0xff] %vm971_vm8, %v946_v38 }
 0x1c2   : > { %977 = vst.msk [vmem:[#allocation2 + $0x28] sm:$0xff] %vm971_vm8, %v934_v40 }
 0x1c4   : > { %v1041_v25 = vpop.permute.xlu1 %1040 }
 0x1c5   : > { %v1029_v43 = vpop.permute.xlu0 %1028  ;;  %1079 = vst.msk [vmem:[#allocation2 + $0x50] sm:$0xff] %vm1068_vm9, %v1041_v25 }
 0x1c6   : > { %1073 = vst.msk [vmem:[#allocation2 + $0x20] sm:$0xff] %vm1068_vm9, %v1029_v43 }
 0x1c8   : > { %v646_v44 = vpop.permute.xlu1 %645 }
 0x1c9   : > { %v368_v45 = vpop.permute.xlu0 %367  ;;  %687 = vst.msk [vmem:[#allocation2 + $0x38] sm:$0xff] %vm679_vm5, %v646_v44 }
 0x1ca   : > { %402 = vst.msk [vmem:[#allocation2 + $0x70] sm:$0xff] %vm387_vm2, %v368_v45 }
 0x1cc   : > { %v741_v46 = vpop.permute.xlu1 %740  ;;  %v1095_v27 = vld [vmem:[#allocation2 + $0x50] sm:$0xff] }
 0x1cd   : > { %v658_v47 = vpop.permute.xlu0 %657  ;;  %v1089_v48 = vld [vmem:[#allocation2 + $0x20] sm:$0xff]  ;;  %783 = vst.msk [vmem:[#allocation2 + $0x30] sm:$0xff] %vm776_vm6, %v741_v46  ;;  %2000 = vmatprep.mubr.msk.f32.mxu1 %vm1106_vm10, %v1095_v27 }
 0x1ce   : > { %693 = vst.msk [vmem:[#allocation2 + $0x68] sm:$0xff] %vm679_vm5, %v658_v47  ;;  %1991 = vmatprep.mubr.msk.f32.mxu0 %vm1106_vm10, %v1089_v48 }
 0x1d0   : > { %v1031_v49 = vpop.permute.xlu1 %1030 }
 0x1d1   : > { %v753_v8 = vpop.permute.xlu0 %752  ;;  %1074 = vst.msk [vmem:[#allocation2 + $0x28] sm:$0xff] %vm1068_vm9, %v1031_v49 }
 0x1d2   : > { %789 = vst.msk [vmem:[#allocation2 + $0x60] sm:$0xff] %vm776_vm6, %v753_v8 }
 0x1d4   : > { %v370_v50 = vpop.permute.xlu1 %369 }
 0x1d5   : > { %v1043_v51 = vpop.permute.xlu0 %1042  ;;  %403 = vst.msk [vmem:[#allocation2 + $0x78] sm:$0xff] %vm387_vm2, %v370_v50  ;;  %vm1659_vm2 = vcmask 64512  }
 0x1d6   : > { %1080 = vst.msk [vmem:[#allocation2 + $0x58] sm:$0xff] %vm1068_vm9, %v1043_v51 }
 0x1d8   : > { %v743_v52 = vpop.permute.xlu1 %742  ;;  %v1090_v54 = vld [vmem:[#allocation2 + $0x28] sm:$0xff] }
 0x1d9   : > { %v465_v53 = vpop.permute.xlu0 %464  ;;  %784 = vst.msk [vmem:[#allocation2 + $0x38] sm:$0xff] %vm776_vm6, %v743_v52  ;;  %1992 = vmatmul.mubr.msk.f32.gmra.mrb[4].mxu0 %vm1106_vm10, %v1090_v54 }
 0x1da   : > { %499 = vst.msk [vmem:[#allocation2 + $0x70] sm:$0xff] %vm484_vm3, %v465_v53 }
 0x1dc   : > { %v839_v9 = vpop.permute.xlu1 %838 }
 0x1dd   : > { %v755_v55 = vpop.permute.xlu0 %754  ;;  %v1096_v30 = vld [vmem:[#allocation2 + $0x58] sm:$0xff]  ;;  %881 = vst.msk [vmem:[#allocation2 + $0x30] sm:$0xff] %vm874_vm7, %v839_v9 }
 0x1de   : > { %790 = vst.msk [vmem:[#allocation2 + $0x68] sm:$0xff] %vm776_vm6, %v755_v55  ;;  %2001 = vmatmul.mubr.msk.f32.gmra.mrb[2].mxu1 %vm1106_vm10, %v1096_v30 }
 0x1e0   : > { %v467_v56 = vpop.permute.xlu1 %466 }
 0x1e1   : > { %v851_v57 = vpop.permute.xlu0 %850  ;;  %500 = vst.msk [vmem:[#allocation2 + $0x78] sm:$0xff] %vm484_vm3, %v467_v56  ;;  %vm1661_vm3 = vcmask 130048  }
 0x1e2   : > { %887 = vst.msk [vmem:[#allocation2 + $0x60] sm:$0xff] %vm874_vm7, %v851_v57 }
 0x1e4   : > { %v841_v58 = vpop.permute.xlu1 %840 }
 0x1e5   : > { %v563_v59 = vpop.permute.xlu0 %562  ;;  %882 = vst.msk [vmem:[#allocation2 + $0x38] sm:$0xff] %vm874_vm7, %v841_v58 }
 0x1e6   : > { %597 = vst.msk [vmem:[#allocation2 + $0x70] sm:$0xff] %vm582_vm4, %v563_v59 }
 0x1e8   : > { %v936_v60 = vpop.permute.xlu1 %935 }
 0x1e9   : > { %v853_v39 = vpop.permute.xlu0 %852  ;;  %978 = vst.msk [vmem:[#allocation2 + $0x30] sm:$0xff] %vm971_vm8, %v936_v60 }
 0x1ea   : > { %888 = vst.msk [vmem:[#allocation2 + $0x68] sm:$0xff] %vm874_vm7, %v853_v39 }
 0x1ec   : > { %v565_v61 = vpop.permute.xlu1 %564 }
 0x1ed   : > { %v948_v41 = vpop.permute.xlu0 %947  ;;  %598 = vst.msk [vmem:[#allocation2 + $0x78] sm:$0xff] %vm582_vm4, %v565_v61  ;;  %vm1663_vm4 = vcmask 195584  }
 0x1ee   : > { %984 = vst.msk [vmem:[#allocation2 + $0x60] sm:$0xff] %vm971_vm8, %v948_v41 }
 0x1f0   : > { %v938_v62 = vpop.permute.xlu1 %937 }
 0x1f1   : > { %v660_v63 = vpop.permute.xlu0 %659  ;;  %979 = vst.msk [vmem:[#allocation2 + $0x38] sm:$0xff] %vm971_vm8, %v938_v62 }
 0x1f2   : > { %694 = vst.msk [vmem:[#allocation2 + $0x70] sm:$0xff] %vm679_vm5, %v660_v63 }
 0x1f4   : > { %v1033_v0 = vpop.permute.xlu1 %1032 }
 0x1f5   : > { %v950_v1 = vpop.permute.xlu0 %949  ;;  %1075 = vst.msk [vmem:[#allocation2 + $0x30] sm:$0xff] %vm1068_vm9, %v1033_v0 }
 0x1f6   : > { %985 = vst.msk [vmem:[#allocation2 + $0x68] sm:$0xff] %vm971_vm8, %v950_v1 }
 0x1f8   : > { %v662_v42 = vpop.permute.xlu1 %661 }
 0x1f9   : > { %v1045_v2 = vpop.permute.xlu0 %1044  ;;  %695 = vst.msk [vmem:[#allocation2 + $0x78] sm:$0xff] %vm679_vm5, %v662_v42  ;;  %vm1665_vm5 = vcmask 261120  }
 0x1fa   : > { %1081 = vst.msk [vmem:[#allocation2 + $0x60] sm:$0xff] %vm1068_vm9, %v1045_v2 }
 0x1fc   : > { %v1035_v3 = vpop.permute.xlu1 %1034  ;;  %v1091_v5 = vld [vmem:[#allocation2 + $0x30] sm:$0xff] }
 0x1fd   : > { %v757_v4 = vpop.permute.xlu0 %756  ;;  %1076 = vst.msk [vmem:[#allocation2 + $0x38] sm:$0xff] %vm1068_vm9, %v1035_v3  ;;  %1994 = vmatprep.mubr.msk.f32.mxu0 %vm1106_vm10, %v1091_v5 }
 0x1fe   : > { %791 = vst.msk [vmem:[#allocation2 + $0x70] sm:$0xff] %vm776_vm6, %v757_v4 }
 0x200   : > { %v759_v7 = vpop.permute.xlu1 %758 }
 0x201   : > { %v1047_v6 = vpop.permute.xlu0 %1046  ;;  %v1097_v10 = vld [vmem:[#allocation2 + $0x60] sm:$0xff]  ;;  %792 = vst.msk [vmem:[#allocation2 + $0x78] sm:$0xff] %vm776_vm6, %v759_v7  ;;  %vm1667_vm6 = vcmask 326656  }
 0x202   : > { %1082 = vst.msk [vmem:[#allocation2 + $0x68] sm:$0xff] %vm1068_vm9, %v1047_v6  ;;  %2003 = vmatprep.mubr.msk.f32.mxu1 %vm1106_vm10, %v1097_v10 }
 0x204   : > { %v857_v12 = vpop.permute.xlu1 %856  ;;  %v1092_v13 = vld [vmem:[#allocation2 + $0x38] sm:$0xff] }
 0x205   : > { %v855_v11 = vpop.permute.xlu0 %854  ;;  %890 = vst.msk [vmem:[#allocation2 + $0x78] sm:$0xff] %vm874_vm7, %v857_v12  ;;  %1995 = vmatmul.mubr.msk.f32.gmra.mrb[6].mxu0 %vm1106_vm10, %v1092_v13 }
 0x206   : > { %889 = vst.msk [vmem:[#allocation2 + $0x70] sm:$0xff] %vm874_vm7, %v855_v11  ;;  %vm1669_vm7 = vcmask 392192  }
 0x208   : > { %v954_v15 = vpop.permute.xlu1 %953 }
 0x209   : > { %v952_v14 = vpop.permute.xlu0 %951  ;;  %v1098_v16 = vld [vmem:[#allocation2 + $0x68] sm:$0xff]  ;;  %987 = vst.msk [vmem:[#allocation2 + $0x78] sm:$0xff] %vm971_vm8, %v954_v15 }
 0x20a   : > { %986 = vst.msk [vmem:[#allocation2 + $0x70] sm:$0xff] %vm971_vm8, %v952_v14  ;;  %2004 = vmatmul.mubr.msk.f32.gmra.mrb[4].mxu1 %vm1106_vm10, %v1098_v16  ;;  %vm1671_vm8 = vcmask 457728  }
 0x20c   : > { %v1051_v19 = vpop.permute.xlu1 %1050 }
 0x20d   : > { %v1049_v17 = vpop.permute.xlu0 %1048  ;;  %1084 = vst.msk [vmem:[#allocation2 + $0x78] sm:$0xff] %vm1068_vm9, %v1051_v19 }
 0x20e   : > { %1083 = vst.msk [vmem:[#allocation2 + $0x70] sm:$0xff] %vm1068_vm9, %v1049_v17  ;;  %vm1673_vm9 = vcmask 523264  }
 0x214   : > { %v1100_v22 = vld [vmem:[#allocation2 + $0x78] sm:$0xff] }
 0x215   : > { %v1099_v21 = vld [vmem:[#allocation2 + $0x70] sm:$0xff] }
 0x216   : > { %2006 = vmatprep.mubr.msk.f32.mxu1 %vm1106_vm10, %v1099_v21 }
 0x217   : > { %2007 = vmatmul.mubr.msk.f32.gmra.mrb[6].mxu1 %vm1106_vm10, %v1100_v22  ;;  %vm1675_vm10 = vcmask 588800  }
 0x230   : > { %v1987_v24 = vpop.f32.mrb[0].mxu0 }
 0x231   : > { %v1225_v28 = vpop.f32.mrb[1].mxu0  ;;  %v1312_v26 = vmul.f32 %v1987_v24, %v3116_v20 }
 0x232   : > { %v1311_v40 = vmul.f32 %v3116_v20, %v1225_v28 }
 0x233   : > { %v1335_v31 = vadd.f32 %v3119_v29, %v1312_v26 }
 0x234   : > { %v1334_v51 = vadd.f32 %v3119_v29, %v1311_v40 }
 0x235   : > { %v1351_v36 = vmax.f32 %v1335_v31, 0.0 }
 0x236   : > { %v1350_v30 = vmax.f32 %v1334_v51, 0.0 }
 0x237   : > { %v1574_v25 = vrot.slane %v1351_v36, 3  ;;  %v1540_v45 = vrot.slane %v1351_v36, 1  ;;  %v1557_v47 = vrot.slane %v1351_v36, 2  ;;  %v1591_v53 = vrot.slane %v1351_v36, 4 }
 0x238   : > { %v1625_v9 = vrot.slane %v1351_v36, 6  ;;  %v1608_v57 = vrot.slane %v1351_v36, 5  ;;  %v1642_v60 = vrot.slane %v1351_v36, 7  ;;  %v1413_v12 = vrot.slane %v1350_v30, 2 }
 0x239   : > { %v1430_v14 = vrot.slane %v1350_v30, 3  ;;  %v1447_v15 = vrot.slane %v1350_v30, 4  ;;  %v1396_v31 = vrot.slane %v1350_v30, 1 }
 0x270   : > { %v3122_v32 = vpop.f32.mrb[0].mxu1 }
 0x271   : > { %v1990_v18 = vpop.f32.mrb[2].mxu0  ;;  %v3125_v35 = vpop.f32.mrb[1].mxu1 }
 0x272   : > { %v1314_v33 = vmul.f32 %v1990_v18, %v3116_v20  ;;  %v1235_v34 = vpop.f32.mrb[3].mxu0 }
 0x273   : > { %v1313_v23 = vmul.f32 %v3116_v20, %v1235_v34 }
 0x274   : > { %v1337_v37 = vadd.f32 %v3119_v29, %v1314_v33 }
 0x275   : > { %v1336_v46 = vadd.f32 %v3119_v29, %v1313_v23 }
 0x276   : > { %v1353_v38 = vmax.f32 %v1337_v37, 0.0 }
 0x277   : > { %v3136_v52 = vmax.f32 %v1336_v46, 0.0 }
 0x278   : > { %v1575_v43 = vrot.slane %v1353_v38, 2  ;;  %v1523_v44 = vrot.slane %v1353_v38, 7  ;;  %v1558_v48 = vrot.slane %v1353_v38, 1  ;;  %v1541_v8 = vsel %vm1375_vm11, %v1353_v38, %v1540_v45 }
 0x279   : > { %v1592_v54 = vrot.slane %v1353_v38, 3  ;;  %v1626_v55 = vrot.slane %v1353_v38, 5  ;;  %v1609_v58 = vrot.slane %v1353_v38, 4  ;;  %v1643_v39 = vrot.slane %v1353_v38, 6 }
 0x27a   : > { %v1576_v27 = vsel %vm1375_vm11, %v1575_v43, %v1574_v25  ;;  %v1524_v49 = vsel %vm1375_vm11, %v1523_v44, %v1351_v36  ;;  %v1559_v50 = vsel %vm1375_vm11, %v1558_v48, %v1557_v47  ;;  %v1374_v61 = vrot.slane %v3136_v52, 7 }
 0x27b   : > { %v3139_v56 = vsel %vm1375_vm11, %v1592_v54, %v1591_v53  ;;  %v3142_v59 = vsel %vm1375_vm11, %v1626_v55, %v1625_v9  ;;  %v1610_v41 = vsel %vm1375_vm11, %v1609_v58, %v1608_v57  ;;  %v1644_v62 = vsel %vm1375_vm11, %v1643_v39, %v1642_v60 }
 0x27c   : > { %v1376_v63 = vsel %vm1375_vm11, %v1374_v61, %v1350_v30  ;;  %v1414_v4 = vrot.slane %v3136_v52, 1  ;;  %v1431_v11 = vrot.slane %v3136_v52, 2  ;;  %v1448_v16 = vrot.slane %v3136_v52, 3 }
 0x27d   : > { %v1482_v40 = vrot.slane %v3136_v52, 5  ;;  %v1465_v43 = vrot.slane %v3136_v52, 4  ;;  %v1499_v44 = vrot.slane %v3136_v52, 6  ;;  %v1397_v46 = vsel %vm1375_vm11, %v3136_v52, %v1396_v31 }
 0x27e   : > { %v1415_v22 = vsel %vm1375_vm11, %v1414_v4, %v1413_v12  ;;  %v1432_v34 = vsel %vm1375_vm11, %v1431_v11, %v1430_v14  ;;  %v1449_v25 = vsel %vm1375_vm11, %v1448_v16, %v1447_v15  ;;  %v1481_v47 = vrot.slane %v1350_v30, 6 }
 0x27f   : > { %v1319_v4 = vmul.f32 %v3116_v20, %v3125_v35 }
 0x2ac   : > { %v1993_v0 = vpop.f32.mrb[4].mxu0 }
 0x2ad   : > { %v1316_v1 = vmul.f32 %v1993_v0, %v3116_v20  ;;  %v1245_v42 = vpop.f32.mrb[5].mxu0 }
 0x2ae   : > { %v1315_v2 = vmul.f32 %v3116_v20, %v1245_v42 }
 0x2af   : > { %v1339_v3 = vadd.f32 %v3119_v29, %v1316_v1 }
 0x2b0   : > { %v1338_v5 = vadd.f32 %v3119_v29, %v1315_v2 }
 0x2b1   : > { %v2002_v6 = vpop.f32.mrb[2].mxu1  ;;  %v1355_v7 = vmax.f32 %v1339_v3, 0.0 }
 0x2b2   : > { %v1275_v10 = vpop.f32.mrb[3].mxu1  ;;  %v1354_v13 = vmax.f32 %v1338_v5, 0.0  ;;  %v1322_v5 = vmul.f32 %v2002_v6, %v3116_v20 }
 0x2b3   : > { %v1577_v17 = vrot.slane %v1355_v7, 1  ;;  %v1525_v19 = vrot.slane %v1355_v7, 6  ;;  %v3156_v21 = vsel %vm1378_vm12, %v1355_v7, %v1559_v50  ;;  %v1542_v28 = vrot.slane %v1355_v7, 7 }
 0x2b4   : > { %v1433_v24 = vrot.slane %v1354_v13, 1  ;;  %v3160_v26 = vsel %vm1378_vm12, %v1354_v13, %v1415_v22  ;;  %v1450_v36 = vrot.slane %v1354_v13, 2  ;;  %v1398_v38 = vrot.slane %v1354_v13, 7 }
 0x2b5   : > { %v3163_v18 = vsel %vm1378_vm12, %v1577_v17, %v1576_v27  ;;  %v3166_v33 = vsel %vm1378_vm12, %v1525_v19, %v1524_v49  ;;  %v3173_v23 = vsel %vm1378_vm12, %v1542_v28, %v1541_v8  ;;  %v1484_v27 = vrot.slane %v1354_v13, 4 }
 0x2b6   : > { %v3170_v37 = vsel %vm1378_vm12, %v1433_v24, %v1432_v34  ;;  %v3180_v45 = vsel %vm1378_vm12, %v1450_v36, %v1449_v25  ;;  %v3185_v48 = vsel %vm1378_vm12, %v1398_v38, %v1397_v46  ;;  %v1464_v49 = vrot.slane %v1350_v30, 5 }
 0x2b7   : > { %v1498_v8 = vrot.slane %v1350_v30, 7  ;;  %v1483_v50 = vsel %vm1375_vm11, %v1482_v40, %v1481_v47  ;;  %v1467_v51 = vrot.slane %v1354_v13, 3  ;;  %v1594_v53 = vrot.slane %v1355_v7, 2 }
 0x2b8   : > { %v1501_v54 = vrot.slane %v1354_v13, 5  ;;  %v3189_v9 = vsel %vm1378_vm12, %v1484_v27, %v1483_v50  ;;  %v1466_v55 = vsel %vm1375_vm11, %v1465_v43, %v1464_v49  ;;  %v1628_v52 = vrot.slane %v1355_v7, 4 }
 0x2b9   : > { %v1500_v57 = vsel %vm1375_vm11, %v1499_v44, %v1498_v8  ;;  %v3194_v58 = vsel %vm1378_vm12, %v1467_v51, %v1466_v55  ;;  %v3198_v60 = vsel %vm1378_vm12, %v1594_v53, %v3139_v56  ;;  %v1611_v39 = vrot.slane %v1355_v7, 3 }
 0x2ba   : > { %v3201_v30 = vsel %vm1378_vm12, %v1501_v54, %v1500_v57  ;;  %v3205_v61 = vsel %vm1378_vm12, %v1628_v52, %v3142_v59  ;;  %v1645_v0 = vrot.slane %v1355_v7, 5  ;;  %v1377_v1 = vrot.slane %v1354_v13, 6 }
 0x2bb   : > { %v3208_v42 = vsel %vm1378_vm12, %v1611_v39, %v1610_v41  ;;  %v1320_v56 = vmul.f32 %v3122_v32, %v3116_v20  ;;  %v1342_v7 = vadd.f32 %v3119_v29, %v1319_v4  ;;  %v1321_v41 = vmul.f32 %v3116_v20, %v1275_v10 }
 0x2bc   : > { %v3211_v2 = vsel %vm1378_vm12, %v1645_v0, %v1644_v62  ;;  %v3214_v3 = vsel %vm1378_vm12, %v1377_v1, %v1376_v63  ;;  %v1345_v62 = vadd.f32 %v3119_v29, %v1322_v5  ;;  %vm1677_vm11 = vcmask 654336  }
 0x2bd   : > { %v1343_v59 = vadd.f32 %v3119_v29, %v1320_v56  ;;  %v3227_v63 = vmax.f32 %v1342_v7, 0.0  ;;  %v1344_v12 = vadd.f32 %v3119_v29, %v1321_v41  ;;  %vm1679_vm12 = vcmask 719872  }
 0x2be   : > { %v3230_v32 = vmax.f32 %v1345_v62, 0.0 }
 0x2bf   : > { %v3224_v11 = vmax.f32 %v1343_v59, 0.0  ;;  %v3234_v13 = vmax.f32 %v1344_v12, 0.0  ;;  %v1436_v14 = vrot.slane %v3227_v63, 7  ;;  %v1419_v17 = vrot.slane %v3227_v63, 6 }
 0x2c0   : > { %v1402_v19 = vrot.slane %v3227_v63, 5  ;;  %v1488_v22 = vrot.slane %v3227_v63, 2  ;;  %v1471_v24 = vrot.slane %v3227_v63, 1  ;;  %v1505_v34 = vrot.slane %v3227_v63, 3 }
 0x2c1   : > { %v1580_v35 = vrot.slane %v3224_v11, 7  ;;  %v1529_v6 = vrot.slane %v3224_v11, 4  ;;  %v1563_v10 = vrot.slane %v3224_v11, 6  ;;  %v1546_v15 = vrot.slane %v3224_v11, 5 }
 0x2c2   : > { %v1632_v36 = vrot.slane %v3224_v11, 2  ;;  %v1615_v38 = vrot.slane %v3224_v11, 1  ;;  %v1582_v25 = vrot.slane %v3230_v32, 6  ;;  %v1531_v43 = vrot.slane %v3230_v32, 3 }
 0x2c3   : > { %v1649_v44 = vrot.slane %v3224_v11, 3  ;;  %v1565_v47 = vrot.slane %v3230_v32, 5  ;;  %v1438_v27 = vrot.slane %v3234_v13, 6  ;;  %v1548_v49 = vrot.slane %v3230_v32, 4 }
 0x2c4   : > { %v1421_v51 = vrot.slane %v3234_v13, 5  ;;  %v1455_v53 = vrot.slane %v3234_v13, 7  ;;  %v1404_v54 = vrot.slane %v3234_v13, 4  ;;  %v1490_v39 = vrot.slane %v3234_v13, 1 }
 0x2c5   : > { %v1599_v0 = vrot.slane %v3230_v32, 7  ;;  %v1507_v4 = vrot.slane %v3234_v13, 2  ;;  %v1634_v59 = vrot.slane %v3230_v32, 1 }
 0x2d8   : > { %v1996_v16 = vpop.f32.mrb[6].mxu0 }
 0x2d9   : > { %v1318_v28 = vmul.f32 %v1996_v16, %v3116_v20  ;;  %v1255_v31 = vpop.f32.mrb[7].mxu0 }
 0x2da   : > { %v1317_v40 = vmul.f32 %v3116_v20, %v1255_v31 }
 0x2db   : > { %v1341_v46 = vadd.f32 %v3119_v29, %v1318_v28 }
 0x2dc   : > { %v1340_v8 = vadd.f32 %v3119_v29, %v1317_v40 }
 0x2dd   : > { %v2005_v50 = vpop.f32.mrb[4].mxu1  ;;  %v3259_v55 = vmax.f32 %v1341_v46, 0.0 }
 0x2de   : > { %v1324_v57 = vmul.f32 %v2005_v50, %v3116_v20  ;;  %v1285_v52 = vpop.f32.mrb[5].mxu1  ;;  %v3264_v1 = vmax.f32 %v1340_v8, 0.0 }
 0x2df   : > { %v1323_v56 = vmul.f32 %v3116_v20, %v1285_v52  ;;  %v1579_v7 = vsel %vm1381_vm13, %v3259_v55, %v3163_v18  ;;  %v1527_v41 = vrot.slane %v3259_v55, 5  ;;  %v1561_v62 = vrot.slane %v3259_v55, 7 }
 0x2e0   : > { %v1347_v5 = vadd.f32 %v3119_v29, %v1324_v57  ;;  %v1581_v16 = vsel %vm1384_vm14, %v1580_v35, %v1579_v7  ;;  %v1435_v28 = vsel %vm1381_vm13, %v3264_v1, %v3170_v37  ;;  %v1544_v31 = vrot.slane %v3259_v55, 6 }
 0x2e1   : > { %v1346_v12 = vadd.f32 %v3119_v29, %v1323_v56  ;;  %v1583_v46 = vsel %vm1387_vm15, %v1582_v25, %v1581_v16  ;;  %v1528_v18 = vsel %vm1381_vm13, %v1527_v41, %v3166_v33  ;;  %v1562_v8 = vsel %vm1381_vm13, %v1561_v62, %v3156_v21 }
 0x2e2   : > { %v3281_v40 = vmax.f32 %v1347_v5, 0.0  ;;  %v1530_v35 = vsel %vm1384_vm14, %v1529_v6, %v1528_v18  ;;  %v1564_v57 = vsel %vm1384_vm14, %v1563_v10, %v1562_v8  ;;  %v1437_v37 = vsel %vm1384_vm14, %v1436_v14, %v1435_v28 }
 0x2e3   : > { %v3288_v50 = vmax.f32 %v1346_v12, 0.0  ;;  %v1532_v56 = vsel %vm1387_vm15, %v1531_v43, %v1530_v35  ;;  %v1566_v5 = vsel %vm1387_vm15, %v1565_v47, %v1564_v57  ;;  %v1439_v21 = vsel %vm1387_vm15, %v1438_v27, %v1437_v37 }
 0x2e4   : > { %v1584_v52 = vrot.slane %v3281_v40, 5  ;;  %v1533_v25 = vrot.slane %v3281_v40, 2  ;;  %v1567_v33 = vrot.slane %v3281_v40, 4  ;;  %v1545_v6 = vsel %vm1381_vm13, %v1544_v31, %v3173_v23 }
 0x2e5   : > { %v1440_v7 = vrot.slane %v3288_v50, 5  ;;  %v1547_v41 = vsel %vm1384_vm14, %v1546_v15, %v1545_v6  ;;  %v1550_v43 = vrot.slane %v3281_v40, 3  ;;  %v1417_v27 = vrot.slane %v3264_v1, 7 }
 0x2e6   : > { %v1585_v10 = vsel %vm1390_vm0, %v1584_v52, %v1583_v46  ;;  %v1534_v14 = vsel %vm1390_vm0, %v1533_v25, %v1532_v56  ;;  %v1568_v62 = vsel %vm1390_vm0, %v1567_v33, %v1566_v5  ;;  %v1549_v12 = vsel %vm1387_vm15, %v1548_v49, %v1547_v41 }
 0x2e7   : > { %v1441_v47 = vsel %vm1390_vm0, %v1440_v7, %v1439_v21  ;;  %v1551_v16 = vsel %vm1390_vm0, %v1550_v43, %v1549_v12  ;;  %v1423_v23 = vrot.slane %v3288_v50, 4  ;;  %v1452_v28 = vrot.slane %v3264_v1, 1 }
 0x2e8   : > { %v1457_v31 = vrot.slane %v3288_v50, 6  ;;  %v1418_v15 = vsel %vm1381_vm13, %v1417_v27, %v3160_v26  ;;  %v1400_v46 = vrot.slane %v3264_v1, 6  ;;  %v1406_v18 = vrot.slane %v3288_v50, 3 }
 0x2e9   : > { %v1486_v8 = vrot.slane %v3264_v1, 3  ;;  %v1420_v35 = vsel %vm1384_vm14, %v1419_v17, %v1418_v15  ;;  %v1453_v57 = vsel %vm1381_vm13, %v1452_v28, %v3180_v45  ;;  %v1469_v37 = vrot.slane %v3264_v1, 2 }
 0x2ea   : > { %v2008_v49 = vpop.f32.mrb[6].mxu1  ;;  %v1474_v52 = vrot.slane %v3288_v50, 7  ;;  %v1422_v25 = vsel %vm1387_vm15, %v1421_v51, %v1420_v35  ;;  %v1454_v5 = vsel %vm1384_vm14, %v3227_v63, %v1453_v57  ;;  %v1401_v33 = vsel %vm1381_vm13, %v1400_v46, %v3185_v48 }
 0x2eb   : > { %v1326_v26 = vmul.f32 %v2008_v49, %v3116_v20  ;;  %v1295_v56 = vpop.f32.mrb[7].mxu1  ;;  %v1424_v21 = vsel %vm1390_vm0, %v1423_v23, %v1422_v25  ;;  %v1456_v45 = vsel %vm1387_vm15, %v1455_v53, %v1454_v5  ;;  %v1403_v7 = vsel %vm1384_vm14, %v1402_v19, %v1401_v33 }
 0x2ec   : > { %v1325_v17 = vmul.f32 %v3116_v20, %v1295_v56  ;;  %v1458_v6 = vsel %vm1390_vm0, %v1457_v31, %v1456_v45  ;;  %v1405_v48 = vsel %vm1387_vm15, %v1404_v54, %v1403_v7  ;;  %v1487_v20 = vsel %vm1381_vm13, %v1486_v8, %v3189_v9 }
 0x2ed   : > { %v1349_v51 = vadd.f32 %v3119_v29, %v1326_v26  ;;  %v1407_v43 = vsel %vm1390_vm0, %v1406_v18, %v1405_v48  ;;  %v1489_v53 = vsel %vm1384_vm14, %v1488_v22, %v1487_v20  ;;  %v1470_v19 = vsel %vm1381_vm13, %v1469_v37, %v3194_v58 }
 0x2ee   : > { %v1348_v41 = vadd.f32 %v3119_v29, %v1325_v17  ;;  %v1491_v54 = vsel %vm1387_vm15, %v1490_v39, %v1489_v53  ;;  %v1472_v9 = vsel %vm1384_vm14, %v1471_v24, %v1470_v19  ;;  %v1596_v29 = vrot.slane %v3259_v55, 1 }
 0x2ef   : > { %v3354_v12 = vmax.f32 %v1349_v51, 0.0  ;;  %v1492_v22 = vsel %vm1390_vm0, %v3288_v50, %v1491_v54  ;;  %v1473_v58 = vsel %vm1387_vm15, %v3234_v13, %v1472_v9  ;;  %v1601_v23 = vrot.slane %v3281_v40, 6 }
 0x2f0   : > { %v3363_v27 = vmax.f32 %v1348_v41, 0.0  ;;  %v1509_v7 = vrot.slane %v3288_v50, 1  ;;  %v1630_v51 = vrot.slane %v3259_v55, 3  ;;  %v1613_v20 = vrot.slane %v3259_v55, 2 }
 0x2f1   : > { %v1586_v28 = vrot.slane %v3354_v12, 4  ;;  %v1535_v39 = vrot.slane %v3354_v12, 1  ;;  %v1569_v31 = vrot.slane %v3354_v12, 3  ;;  %v1552_v24 = vrot.slane %v3354_v12, 2 }
 0x2f2   : > { %v1442_v15 = vrot.slane %v3363_v27, 4  ;;  %v1425_v46 = vrot.slane %v3363_v27, 3  ;;  %v1459_v18 = vrot.slane %v3363_v27, 5  ;;  %v1408_v8 = vrot.slane %v3363_v27, 2 }
 0x2f3   : > { %v1587_v49 = vsel %vm1393_vm1, %v1586_v28, %v1585_v10  ;;  %v1536_v35 = vsel %vm1393_vm1, %v1535_v39, %v1534_v14  ;;  %v1570_v57 = vsel %vm1393_vm1, %v1569_v31, %v1568_v62  ;;  %v1553_v37 = vsel %vm1393_vm1, %v1552_v24, %v1551_v16 }
 0x2f4   : > { %1588 = vrot.lane.b32.xlu0 %v1587_v49, %s2393_s10  ;;  %1537 = vrot.lane.b32.xlu1 %v1536_v35, %s2394_s5  ;;  %v1443_v26 = vsel %vm1393_vm1, %v1442_v15, %v1441_v47  ;;  %v1426_v56 = vsel %vm1393_vm1, %v1425_v46, %v1424_v21  ;;  %v1460_v25 = vsel %vm1393_vm1, %v1459_v18, %v1458_v6  ;;  %v1493_v5 = vrot.slane %v3363_v27, 7  ;;  %s3562_s10 = sld [smem:[#allocation20_spill]] }
 0x2f5   : > { %v1409_v10 = vsel %vm1393_vm1, %v1408_v8, %v1407_v43  ;;  %v1475_v14 = vsel %vm1390_vm0, %v1474_v52, %v1473_v58  ;;  %v1476_v62 = vrot.slane %v3363_v27, 6  ;;  %v1597_v16 = vsel %vm1381_vm13, %v1596_v29, %v3198_v60 }
 0x2f6   : > { %v1494_v33 = vsel %vm1393_vm1, %v1493_v5, %v1492_v22  ;;  %v1598_v47 = vsel %vm1384_vm14, %v3224_v11, %v1597_v16  ;;  %v1603_v17 = vrot.slane %v3354_v12, 5  ;;  %v1503_v21 = vrot.slane %v3264_v1, 4 }
 0x2f7   : > { %v1477_v45 = vsel %vm1393_vm1, %v1476_v62, %v1475_v14  ;;  %v1600_v52 = vsel %vm1387_vm15, %v1599_v0, %v1598_v47  ;;  %v1637_v48 = vrot.slane %v3354_v12, 7  ;;  %v1631_v43 = vsel %vm1381_vm13, %v1630_v51, %v3205_v61 }
 0x2f8   : > { %1571 = vrot.lane.b32.xlu1 %v1570_v57, %s2395_s28  ;;  %1444 = vrot.lane.b32.xlu0 %v1443_v26, %s2390_s14  ;;  %v1602_v60 = vsel %vm1390_vm0, %v1601_v23, %v1600_v52  ;;  %v1504_v6 = vsel %vm1381_vm13, %v1503_v21, %v3201_v30  ;;  %v1618_v53 = vrot.slane %v3281_v40, 7  ;;  %v1633_v30 = vsel %vm1384_vm14, %v1632_v36, %v1631_v43  ;;  %s1691_s28 = scalar_lea.sflag [#allocation5], %s2660_s13 }
 0x2f9   : > { %v1604_v41 = vsel %vm1393_vm1, %v1603_v17, %v1602_v60  ;;  %v1506_v0 = vsel %vm1384_vm14, %v1505_v34, %v1504_v6  ;;  %v1614_v54 = vsel %vm1381_vm13, %v1613_v20, %v3208_v42  ;;  %v1620_v9 = vrot.slane %v3354_v12, 6 }
 0x2fa   : > { %v1508_v19 = vsel %vm1387_vm15, %v1507_v4, %v1506_v0  ;;  %v1635_v61 = vsel %vm1387_vm15, %v1634_v59, %v1633_v30  ;;  %v1616_v29 = vsel %vm1384_vm14, %v1615_v38, %v1614_v54  ;;  %v1647_v4 = vrot.slane %v3259_v55, 4 }
 0x2fb   : > { %v1510_v34 = vsel %vm1390_vm0, %v1509_v7, %v1508_v19  ;;  %v1636_v36 = vsel %vm1390_vm0, %v3281_v40, %v1635_v61  ;;  %v1617_v22 = vsel %vm1387_vm15, %v3230_v32, %v1616_v29  ;;  %v1653_v59 = vrot.slane %v3281_v40, 1 }
 0x2fc   : > { %1554 = vrot.lane.b32.xlu0 %v1553_v37, %s2396_s4  ;;  %1427 = vrot.lane.b32.xlu1 %v1426_v56, %s2388_s11  ;;  %v1511_v42 = vsel %vm1393_vm1, %v3363_v27, %v1510_v34  ;;  %v1638_v58 = vsel %vm1393_vm1, %v1637_v48, %v1636_v36  ;;  %v1619_v38 = vsel %vm1390_vm0, %v1618_v53, %v1617_v22  ;;  %v1651_v23 = vrot.slane %v3230_v32, 2  ;;  %s1950_s11 = sshll.u32 %s2365_s19, 1  ;;  %s273_s19 = scalar_lea.vmem [#allocation11], %s1833_s25 }
 0x2fd   : > { %v1648_v55 = vsel %vm1381_vm13, %v1647_v4, %v3211_v2  ;;  %v1621_v28 = vsel %vm1393_vm1, %v1620_v9, %v1619_v38  ;;  %v1380_v24 = vrot.slane %v3264_v1, 5  ;;  %v1383_v2 = vrot.slane %v3227_v63, 4  ;;  %s1702_s8 = sadd.s32 %s2361_s18, %s1950_s11  ;;  %s1706_s7 = sshll.u32 %s273_s19, 4  ;;  %s3474_s7 = int_to_ptr.vmem [resolvable:$true] %s1706_s7 }
 0x2fe   : > { %v1650_v39 = vsel %vm1384_vm14, %v1649_v44, %v1648_v55  ;;  %v1389_v32 = vrot.slane %v3288_v50, 2  ;;  %v1386_v11 = vrot.slane %v3234_v13, 3  ;;  %v1392_v44 = vrot.slane %v3363_v27, 1  ;;  %s1951_s14 = sshll.u32 %s1702_s8, 7  ;;  %s2271_s4 = scalar_lea.vmem %s3474_s7, 128 }
 0x2ff   : > { %v1652_v31 = vsel %vm1387_vm15, %v1651_v23, %v1650_v39  ;;  %v1382_v1 = vsel %vm1381_vm13, %v1380_v24, %v3214_v3  ;;  %vm1681_vm13 = vcmask 785408   ;;  %s3472_s5 = scalar_lea.hbm %s3562_s10, %s1951_s14  ;;  %p2272_p6 = scmp.ne.s32.totalorder %s3474_s7, %s2271_s4 }
 0x300   : > { %1461 = vrot.lane.b32.xlu1 %v1460_v25, %s2392_s12  ;;  %1410 = vrot.lane.b32.xlu0 %v1409_v10, %s2385_s27  ;;  %v1654_v40 = vsel %vm1390_vm0, %v1653_v59, %v1652_v31  ;;  %v1385_v46 = vsel %vm1384_vm14, %v1383_v2, %v1382_v1  ;;  %s2402_s27 = smov 104   ;;  %vm1683_vm14 = vcmask 850944  }
 0x301   : > { %v1655_v15 = vsel %vm1393_vm1, %v3354_v12, %v1654_v40  ;;  %v1388_v18 = vsel %vm1387_vm15, %v1386_v11, %v1385_v46  ;;  %vm1685_vm15 = vcmask 916480   ;;  %p2273_p0 = pnand %p2272_p6, %p2600_p3 }
 0x302   : > { %v1391_v63 = vsel %vm1390_vm0, %v1389_v32, %v1388_v18  ;;  %vm1687_vm0 = vcmask 982016  }
 0x303   : > { %v1394_v50 = vsel %vm1393_vm1, %v1392_v44, %v1391_v63  ;;  %p2274_p10 = pneg %p2273_p0 }
 0x304   : > { %1495 = vrot.lane.b32.xlu1 %v1494_v33, %s2397_s15  ;;  %1478 = vrot.lane.b32.xlu0 %v1477_v45, %s2398_s9  ;;  %s2404_s15 = smov [#allocation11]  }
 0x305   : > { %s2275_s9 = sshll.u32 %s2404_s15, 4  ;;  %s2276_s9 = int_to_ptr.vmem [resolvable:$false] %s2275_s9 }
 0x306   : > { %p2278_p5 = scmp.lt.s32.totalorder %s3474_s7, %s2276_s9 }
 0x308   : > { %1605 = vrot.lane.b32.xlu1 %v1604_v41, %s2399_s30  ;;  %1512 = vrot.lane.b32.xlu0 %v1511_v42, %s2400_s1  ;;  %s2277_s30 = scalar_lea.vmem %s2276_s9, 256 }
 0x309   : > { %p2279_p7 = scmp.lt.s32.totalorder %s2277_s30, %s2271_s4 }
 0x30b   : > { %p2280_p11 = por %p2279_p7, %p2278_p5 }
 0x30c   : > { %1639 = vrot.lane.b32.xlu1 %v1638_v58, %s2401_s2  ;;  %1622 = vrot.lane.b32.xlu0 %v1621_v28, %s2402_s27 }
 0x30d   : > { %p2281_p1 = pnand %p2280_p11, %p2274_p10 }
 0x310   : > { %1656 = vrot.lane.b32.xlu0 %v1655_v15, %s2403_s29 }
 0x366   : > { %v1589_v3 = vpop.permute.xlu0 %1588  ;;  %v1538_v13 = vpop.permute.xlu1 %1537 }
 0x36a   : > { %v1572_v12 = vpop.permute.xlu1 %1571  ;;  %v1445_v27 = vpop.permute.xlu0 %1444 }
 0x36e   : > { %v1555_v8 = vpop.permute.xlu0 %1554  ;;  %v1428_v49 = vpop.permute.xlu1 %1427 }
 0x372   : > { %v1462_v35 = vpop.permute.xlu1 %1461  ;;  %v1411_v57 = vpop.permute.xlu0 %1410 }
 0x373   : > { %v1660_v37 = vsel %vm1659_vm2, %v1394_v50, %v1411_v57 }
 0x374   : > { %v1662_v26 = vsel %vm1661_vm3, %v1660_v37, %v1428_v49 }
 0x375   : > { %v1664_v56 = vsel %vm1663_vm4, %v1662_v26, %v1445_v27 }
 0x376   : > { %v1496_v25 = vpop.permute.xlu1 %1495  ;;  %v1479_v5 = vpop.permute.xlu0 %1478  ;;  %v1666_v10 = vsel %vm1665_vm5, %v1664_v56, %v1462_v35 }
 0x377   : > { %v1668_v14 = vsel %vm1667_vm6, %v1666_v10, %v1479_v5 }
 0x378   : > { %v1670_v16 = vsel %vm1669_vm7, %v1668_v14, %v1496_v25 }
 0x37a   : > { %v1513_v62 = vpop.permute.xlu0 %1512  ;;  %v1606_v33 = vpop.permute.xlu1 %1605 }
 0x37b   : > { %v1672_v47 = vsel %vm1671_vm8, %v1670_v16, %v1513_v62 }
 0x37c   : > { %v1674_v17 = vsel %vm1673_vm9, %v1672_v47, %v1538_v13 }
 0x37d   : > { %v1676_v21 = vsel %vm1675_vm10, %v1674_v17, %v1555_v8 }
 0x37e   : > { %v1623_v45 = vpop.permute.xlu0 %1622  ;;  %v1678_v52 = vsel %vm1677_vm11, %v1676_v21, %v1572_v12  ;;  %v1640_v60 = vpop.permute.xlu1 %1639 }
 0x37f   : > { %v1680_v7 = vsel %vm1679_vm12, %v1678_v52, %v1589_v3 }
 0x380   : > { %v1682_v51 = vsel %vm1681_vm13, %v1680_v7, %v1606_v33 }
 0x381   : > { %v1684_v6 = vsel %vm1683_vm14, %v1682_v51, %v1623_v45 }
 0x382   : > { %v1657_v48 = vpop.permute.xlu0 %1656  ;;  %v1686_v20 = vsel %vm1685_vm15, %v1684_v6, %v1640_v60 }
 0x383   : > { %v1688_v41 = vsel %vm1687_vm0, %v1686_v20, %v1657_v48 }
 0x384   : > { %1689 = vst [vmem:[%s273_s19] sm:$0xff] %v1688_v41 }
 0x385   : > { %2284 = shalt.err (!%p2281_p1)
}
 0x386   : > { %s2285_s13 = scalar_lea.hbm %s3472_s5, 128  ;;  %s2289_s27 = scalar_lea.hbm %s3562_s10, 512 }
 0x387   : > { %p2286_p2 = scmp.ne.s32.totalorder %s3472_s5, %s2285_s13  ;;  %p2290_p13 = scmp.lt.u32.totalorder %s3472_s5, %s3562_s10 }
 0x388   : > { %p2291_p4 = scmp.lt.u32.totalorder %s2289_s27, %s2285_s13  ;;  %p2293_p6 = scmp.lt.u32.totalorder %s2285_s13, %s3472_s5 }
 0x389   : > { %p2287_p8 = pnand %p2286_p2, %p2600_p3 }
 0x38a   : > { %p2292_p9 = por %p2291_p4, %p2290_p13 }
 0x38b   : > { %p2288_p12 = pneg %p2287_p8 }
 0x38c   : > { %p2294_p0 = por %p2293_p6, %p2292_p9 }
 0x38e   : > { %p2295_p10 = pnand %p2294_p0, %p2288_p12 }
 0x390   : > { %2298 = shalt.err (!%p2295_p10)
}
 0x391   : > { %2041 = dma.vmem_to_hbm [thread:$0]  (%p2600_p3), %s3474_s7, 128, %s3472_s5, %s1691_s28  }
 0x392 PF: > { %s3563_s11 = sld [smem:[#allocation16_spill]]  ;;  %s3564_s8 = sld [smem:[#allocation17_spill]] }
 0x393   : > { %p2068_p5 = scmp.ge.s32.totalorder %s2377_s22, 2 }
 0x398   : > { %s1718_s14 = sand.u32 1, %s3563_s11   ;;  %p3565_p7 = scmp.ne.s32.totalorder %s3564_s8, 0 }
 0x399   : > { %s1719_s19 = scalar_lea.sflag [#allocation5], %s1718_s14 }
 0x39a   : > { %p2058_p11 = pnand %p2068_p5, %p3565_p7 }
 0x39c   : > { %2344 = dma.done.wait (!%p2058_p11), %s1719_s19, 128  }
 0x39d   : > { %2346 = vsyncadd (!%p2058_p11), %s1719_s19, 4294967168  ;;  %s22_s22 = sadd.s32 1, %s2377_s22   ;;  %s3566_s15 = smov %s2353_s16 }
 0x39e   : > { %p19_p1 = scmp.ge.s32.totalorder %s22_s22, 6   ;;  %s3567_s16 = smov %s2357_s17 }
 0x39f   : > { %s3568_s17 = smov %s2617_s26  ;;  %s3569_s18 = smov %s2369_s20 }
 0x3a0   : > { %s3570_s19 = smov %s2373_s21  ;;  %s3571_s20 = smov %s3574_s24 }
 0x3a1   : > { %s3572_s21 = smov %s3578_s6  ;;  %21 = sbr.rel (!%p19_p1) target bundleno = 13 (0xd), region = 95 }
 0x3a8   :  { %1724 = vsyncpa [#allocation4], 1 }
 0x3a9   :  { %1726 = vsyncpa [#allocation4 + $0x1], 1 }
 0x3aa   :  { %1727 = vsyncpa [#allocation7], 1 }
 0x3ab   :  { %1728 = vsyncpa [#allocation10], 1 }
 0x3ac   :  { %1729 = vsyncpa [#allocation5], 1 }
 0x3ad   :  { %1731 = vsyncpa [#allocation5 + $0x1], 1 }

</bundles_post_ra>
